<compile_context>
chip_gen: v7x
topology: tpu7x:2x2x1
jax: 0.10.0
libtpu: 0.0.40
codegen_flags: <defaults>
</compile_context>

<pallas_src>
import jax
import jax.numpy as jnp
from jax.experimental import pallas as pl
from jax.experimental.pallas import tpu as pltpu

EPS = 1e-5
_COL0 = 8          # sublane-aligned column base of the padded depthwise scratch
_MXU_MIN_CIN = 8   # below this the 1x1 conv stays on the unrolled VPU path


# ----------------------------- in-kernel helpers ----------------------------

def _pw_bn(x, w, scale, shift, relu):
    """1x1 conv (no bias) + folded BN (+ optional ReLU).

    x: (R, S, Cin) value, w: (Cin, Cout), scale/shift: (Cout,).
    Cin >= _MXU_MIN_CIN -> one MXU matmul on the flattened (R*S, Cin) matrix
    (free relayout when S % 8 == 0); otherwise an unrolled VPU broadcast-MAC
    with two interleaved accumulators.  f32 accumulation in both paths.
    """
    r, s, cin = x.shape
    cout = w.shape[1]
    if cin >= _MXU_MIN_CIN:
        acc = jnp.dot(x.reshape(r * s, cin).astype(jnp.float32), w,
                      preferred_element_type=jnp.float32)
        acc = acc.reshape(r, s, cout)
    else:
        a0 = jnp.zeros((r, s, cout), jnp.float32)
        a1 = jnp.zeros((r, s, cout), jnp.float32)
        for k in range(cin):
            term = x[..., k:k + 1].astype(jnp.float32) * w[k, :]
            if k % 2 == 0:
                a0 = a0 + term
            else:
                a1 = a1 + term
        acc = a0 + a1
    y = acc * scale + shift
    return jnp.maximum(y, 0.0) if relu else y


def _dw3x3_s1(v, dwp, pad_ref):
    """Depthwise 3x3, stride 1, pad 1, + folded BN.  v: (H, W, C) f32 value.

    dwp: (11, C) = [9 taps (row-major di*3+dj); scale; shift].
    pad_ref: (H+2, _COL0+W+1, C) f32 scratch.  Only the halo cells that the
    taps actually read are zeroed each step; the interior (stored at the
    sublane-aligned column base _COL0) is fully overwritten each step.
    """
    H, W, C = v.shape
    WP = pad_ref.shape[1]
    zrow = jnp.zeros((1, WP, C), jnp.float32)
    zcol = jnp.zeros((H + 2, 1, C), jnp.float32)
    pad_ref[0:1, :, :] = zrow                              # top halo row
    pad_ref[H + 1:H + 2, :, :] = zrow                      # bottom halo row
    pad_ref[:, _COL0 - 1:_COL0, :] = zcol                  # left halo col
    pad_ref[:, _COL0 + W:_COL0 + W + 1, :] = zcol          # right halo col
    pad_ref[1:H + 1, _COL0:_COL0 + W, :] = v.astype(jnp.float32)
    accs = []
    for di in range(3):
        a = None
        for dj in range(3):
            c0 = _COL0 - 1 + dj
            t = pad_ref[di:di + H, c0:c0 + W, :] * dwp[di * 3 + dj, :]
            a = t if a is None else a + t
        accs.append(a)
    acc = (accs[0] + accs[1]) + accs[2]
    return acc * dwp[9, :] + dwp[10, :]


def _dw3x3_s2(x00, x01, x10, x11, dwp, pad_ref):
    """Depthwise 3x3, stride 2, pad 1, + folded BN; computes ONLY the strided
    output (Hh, Wh, C).

    Inputs are the four parity planes xPQ[r, c, :] = x[2r+P, 2c+Q, :].
    dwp: (11, C).  pad_ref: (4, Hh+1, _COL0+Wh, C) f32 scratch holding
      plane(pu,pv)[r, c] := xpad[2r+pu, 2c+pv]   (xpad = x zero-padded by 1),
    with plane-column 0 at scratch column (_COL0-1) for pv=0 and _COL0 for
    pv=1, so every interior store is sublane-aligned and every tap is a
    static unit-stride slice.  Only the read halo (top row of the pu=0 planes,
    left column of the pv=0 planes) is zeroed each step.
    """
    Hh, Wh, C = x00.shape
    ztop = jnp.zeros((1, Wh + 1, C), jnp.float32)
    zcol = jnp.zeros((Hh + 1, 1, C), jnp.float32)
    pad_ref[0, 0:1, _COL0 - 1:_COL0 + Wh, :] = ztop        # plane (pu,pv)=(0,0)
    pad_ref[1, 0:1, _COL0 - 1:_COL0 + Wh, :] = ztop        # plane (0,1)
    pad_ref[0, :, _COL0 - 1:_COL0, :] = zcol               # plane (0,0)
    pad_ref[2, :, _COL0 - 1:_COL0, :] = zcol               # plane (1,0)
    pad_ref[0, 1:Hh + 1, _COL0:_COL0 + Wh, :] = x11.astype(jnp.float32)  # (0,0)
    pad_ref[1, 1:Hh + 1, _COL0:_COL0 + Wh, :] = x10.astype(jnp.float32)  # (0,1)
    pad_ref[2, 0:Hh, _COL0:_COL0 + Wh, :] = x01.astype(jnp.float32)      # (1,0)
    pad_ref[3, 0:Hh, _COL0:_COL0 + Wh, :] = x00.astype(jnp.float32)      # (1,1)
    accs = []
    for di in range(3):
        a = None
        for dj in range(3):
            pu, ar = di % 2, di // 2
            pv, b = dj % 2, dj // 2
            cb = (_COL0 - 1) if pv == 0 else _COL0
            t = pad_ref[pu * 2 + pv, ar:ar + Hh, cb + b:cb + b + Wh, :] \
                * dwp[di * 3 + dj, :]
            a = t if a is None else a + t
        accs.append(a)
    acc = (accs[0] + accs[1]) + accs[2]
    return acc * dwp[9, :] + dwp[10, :]


# ------------------------------ fused kernels -------------------------------

def _basic_kernel(x_ref, w1_ref, bn1_ref, dwp_ref, w2_ref, bn2_ref,
                  o_ref, pad_ref):
    # basic mode: out = concat([x1, pw2(dw(pw1(x2)))], channel)  (pre-shuffle)
    dpb = w1_ref.shape[0]
    x = x_ref[0]                                    # (H, W, 2*dpb)
    x1 = x[:, :, :dpb]
    x2 = x[:, :, dpb:]
    t = _pw_bn(x2, w1_ref[...], bn1_ref[0], bn1_ref[1], relu=True)
    t = _dw3x3_s1(t, dwp_ref[...], pad_ref)
    t = _pw_bn(t, w2_ref[...], bn2_ref[0], bn2_ref[1], relu=True)
    # one full-width lane-dense store (no masked partial-lane vst)
    o_ref[0] = jnp.concatenate([x1.astype(jnp.float32), t],
                               axis=-1).astype(o_ref.dtype)


def _down_kernel(xp_ref,
                 dwp1_ref, wp1_ref, bnp1_ref,       # branch1: dw3x3 s2, 1x1
                 w21_ref, bn21_ref,                 # branch2: 1x1
                 dwp2_ref,                          # branch2: dw3x3 s2
                 w22_ref, bn22_ref,                 # branch2: 1x1
                 o_ref, pad1_ref, pad2_ref):
    C = dwp1_ref.shape[1]
    Hh, Wh = o_ref.shape[1], o_ref.shape[2]
    # Parity planes via static slices of the free (Hh, 2, Wh, 2C) view:
    # lanes [0:C] = even W, lanes [C:2C] = odd W; middle dim = H parity.
    x00 = xp_ref[0, :, 0, :, 0:C].astype(jnp.float32)
    x01 = xp_ref[0, :, 0, :, C:2 * C].astype(jnp.float32)
    x10 = xp_ref[0, :, 1, :, 0:C].astype(jnp.float32)
    x11 = xp_ref[0, :, 1, :, C:2 * C].astype(jnp.float32)
    # ---- branch1: dw3x3(s2)+BN -> 1x1+BN+ReLU ----
    y = _dw3x3_s2(x00, x01, x10, x11, dwp1_ref[...], pad1_ref)
    y = _pw_bn(y, wp1_ref[...], bnp1_ref[0], bnp1_ref[1], relu=True)
    # ---- branch2: full-res 1x1+BN+ReLU (ONE matmul over all 4 parity planes)
    #      -> dw3x3(s2)+BN -> 1x1+BN+ReLU ----
    xcat = jnp.concatenate([x00, x01, x10, x11], axis=0)        # (4*Hh, Wh, C)
    tcat = _pw_bn(xcat, w21_ref[...], bn21_ref[0], bn21_ref[1], relu=True)
    t00, t01 = tcat[0:Hh], tcat[Hh:2 * Hh]
    t10, t11 = tcat[2 * Hh:3 * Hh], tcat[3 * Hh:4 * Hh]
    t = _dw3x3_s2(t00, t01, t10, t11, dwp2_ref[...], pad2_ref)
    t = _pw_bn(t, w22_ref[...], bn22_ref[0], bn22_ref[1], relu=True)
    o_ref[0] = jnp.concatenate([y, t], axis=-1).astype(o_ref.dtype)


# ------------------------------ host wrappers -------------------------------

def _bcast_spec(shape):
    rank = len(shape)
    return pl.BlockSpec(shape, lambda b, _r=rank: (0,) * _r)


def _pack_bn(scale, shift):
    return jnp.stack([scale, shift], axis=0)                   # (2, C)


def _pack_dw(w33, scale, shift):
    c = scale.shape[0]
    return jnp.concatenate([w33.reshape(9, c),
                            scale.reshape(1, c),
                            shift.reshape(1, c)], axis=0)      # (11, C)


def shuffle_unit_basic_pallas(x_nchw, pw1, dw, pw2):
    """Fused basic-mode shuffle unit; NCHW in, pre-shuffle NHWC out."""
    B, C, H, W = x_nchw.shape
    dpb = C // 2
    x = jnp.transpose(x_nchw, (0, 2, 3, 1))                    # NCHW -> NHWC
    w1, s1, h1 = pw1
    w2, s2, h2 = pw2
    itemsize = x.dtype.itemsize
    wpad = _COL0 + W + 1
    scr_bytes = (H + 2) * wpad * dpb * 4
    io_bytes = 2 * 2 * H * W * C * itemsize                    # dbl-buffered io
    vmem_limit = min(int(1.5 * (io_bytes + scr_bytes)) + (8 << 20), 100 << 20)
    flops = int(B * H * W * dpb * (4 * dpb + 26))
    return pl.pallas_call(
        _basic_kernel,
        out_shape=jax.ShapeDtypeStruct((B, H, W, C), x.dtype),
        grid=(B,),
        in_specs=[
            pl.BlockSpec((1, H, W, C), lambda b: (b, 0, 0, 0)),
            _bcast_spec((dpb, dpb)), _bcast_spec((2, dpb)),
            _bcast_spec((11, dpb)),
            _bcast_spec((dpb, dpb)), _bcast_spec((2, dpb)),
        ],
        out_specs=pl.BlockSpec((1, H, W, C), lambda b: (b, 0, 0, 0)),
        scratch_shapes=[pltpu.VMEM((H + 2, wpad, dpb), jnp.float32)],
        compiler_params=pltpu.CompilerParams(
            dimension_semantics=("parallel",),
            vmem_limit_bytes=vmem_limit),
        cost_estimate=pl.CostEstimate(
            flops=flops, transcendentals=0,
            bytes_accessed=int(2 * B * H * W * C * itemsize)),
    )(x, w1, _pack_bn(s1, h1), _pack_dw(*dw), w2, _pack_bn(s2, h2))


def shuffle_unit_down_pallas(x_nchw, b1_dw, b1_pw, b2_pw1, b2_dw, b2_pw2):
    """Fused downsample-mode shuffle unit; NCHW in, pre-shuffle NHWC out."""
    B, C, H, W = x_nchw.shape
    assert H % 2 == 0 and W % 2 == 0, "downsample path assumes even H, W"
    Hh, Wh = H // 2, W // 2
    dpb = b1_pw[0].shape[1]
    out_c = 2 * dpb
    # NCHW -> NHWC (one copy, same as basic mode); the (Hh, 2, Wh, 2C) parity
    # view is a pure-metadata reshape (no extra HBM round trip).
    xp = jnp.transpose(x_nchw, (0, 2, 3, 1)).reshape(B, Hh, 2, Wh, 2 * C)
    wp1, sp1, hp1 = b1_pw
    w21, s21, h21 = b2_pw1
    w22, s22, h22 = b2_pw2
    itemsize = x_nchw.dtype.itemsize
    wpad = _COL0 + Wh
    scr_bytes = 4 * (Hh + 1) * wpad * (C + dpb) * 4
    io_bytes = 2 * (H * W * C + Hh * Wh * out_c) * itemsize
    vmem_limit = min(int(1.5 * (io_bytes + scr_bytes)) + (8 << 20), 100 << 20)
    flops = int(B * (2 * H * W * C * dpb
                     + Hh * Wh * (18 * C + 2 * C * dpb + 18 * dpb
                                  + 2 * dpb * dpb + 16 * dpb)))
    return pl.pallas_call(
        _down_kernel,
        out_shape=jax.ShapeDtypeStruct((B, Hh, Wh, out_c), x_nchw.dtype),
        grid=(B,),
        in_specs=[
            pl.BlockSpec((1, Hh, 2, Wh, 2 * C), lambda b: (b, 0, 0, 0, 0)),
            _bcast_spec((11, C)),
            _bcast_spec((C, dpb)), _bcast_spec((2, dpb)),
            _bcast_spec((C, dpb)), _bcast_spec((2, dpb)),
            _bcast_spec((11, dpb)),
            _bcast_spec((dpb, dpb)), _bcast_spec((2, dpb)),
        ],
        out_specs=pl.BlockSpec((1, Hh, Wh, out_c), lambda b: (b, 0, 0, 0)),
        scratch_shapes=[pltpu.VMEM((4, Hh + 1, wpad, C), jnp.float32),
                        pltpu.VMEM((4, Hh + 1, wpad, dpb), jnp.float32)],
        compiler_params=pltpu.CompilerParams(
            dimension_semantics=("parallel",),
            vmem_limit_bytes=vmem_limit),
        cost_estimate=pl.CostEstimate(
            flops=flops, transcendentals=0,
            bytes_accessed=int((B * H * W * C + B * Hh * Wh * out_c)
                               * itemsize)),
    )(xp,
      _pack_dw(*b1_dw), wp1, _pack_bn(sp1, hp1),
      w21, _pack_bn(s21, h21),
      _pack_dw(*b2_dw),
      w22, _pack_bn(s22, h22))


# ------------------------- pure-JAX reference path --------------------------

def pointwise_conv_bn_ref(x, w, scale, shift, *, apply_relu):
    y = jnp.einsum('bhwc,cd->bhwd', x, w,
                   precision=jax.lax.Precision.HIGHEST) * scale + shift
    return jnp.maximum(y, 0.0) if apply_relu else y


def depthwise3x3_bn_ref(x, w33, scale, shift, *, stride):
    B, H, W, C = x.shape
    xpad = jnp.pad(x, ((0, 0), (1, 1), (1, 1), (0, 0)))
    acc = jnp.zeros((B, H, W, C), jnp.float32)
    for di in range(3):
        for dj in range(3):
            acc = acc + xpad[:, di:di + H, dj:dj + W, :] * w33[di, dj, :]
    y = acc * scale + shift
    return y[:, ::stride, ::stride, :] if stride > 1 else y


# -------------------------------- parameters --------------------------------

def _bn_scale_shift(keys, c):
    gamma = 1.0 + 0.1 * jax.random.normal(keys[0], (c,), jnp.float32)
    beta = 0.1 * jax.random.normal(keys[1], (c,), jnp.float32)
    rmean = 0.1 * jax.random.normal(keys[2], (c,), jnp.float32)
    rvar = jnp.abs(jax.random.normal(keys[3], (c,), jnp.float32)) + 0.5
    scale = gamma / jnp.sqrt(rvar + EPS)
    shift = beta - rmean * scale
    return scale, shift


def pw_params(key, cin, cout):
    keys = jax.random.split(key, 5)
    # equals torch Conv2d weight[co, ci, 0, 0] transposed to (ci, co)
    w = 0.2 * jax.random.normal(keys[0], (cin, cout), jnp.float32)
    scale, shift = _bn_scale_shift(keys[1:5], cout)
    return w, scale, shift


def dw_params(key, c):
    keys = jax.random.split(key, 5)
    # equals torch depthwise weight[c, 0, di, dj] transposed to (di, dj, c)
    w33 = 0.2 * jax.random.normal(keys[0], (3, 3, c), jnp.float32)
    scale, shift = _bn_scale_shift(keys[1:5], c)
    return w33, scale, shift


# -------------------------------- shuffle unit -------------------------------

def channel_shuffle_nhwc(x, groups):
    B, H, W, C = x.shape
    x = x.reshape(B, H, W, groups, C // groups)
    x = jnp.swapaxes(x, 3, 4)
    return x.reshape(B, H, W, C)


class ShuffleUnit:
    """JAX/Pallas equivalent of the PyTorch `shuffle_unit` module (inference)."""

    def __init__(self, in_dim, out_dim, stride, key):
        self.mode = 'basic' if stride == 1 else 'downsample'
        self.stride = stride
        dpb = out_dim // 2
        assert stride != 1 or in_dim == dpb << 1
        keys = jax.random.split(key, 5)
        if self.mode == 'downsample':
            self.b1_dw = dw_params(keys[0], in_dim)
            self.b1_pw = pw_params(keys[1], in_dim, dpb)
        b2_in = in_dim if self.mode == 'downsample' else dpb
        self.b2_pw1 = pw_params(keys[2], b2_in, dpb)
        self.b2_dw = dw_params(keys[3], dpb)
        self.b2_pw2 = pw_params(keys[4], dpb, dpb)

    # pure-JAX reference branches
    def _branch1_ref(self, x):
        y = depthwise3x3_bn_ref(x, *self.b1_dw, stride=self.stride)
        return pointwise_conv_bn_ref(y, *self.b1_pw, apply_relu=True)

    def _branch2_ref(self, x):
        y = pointwise_conv_bn_ref(x, *self.b2_pw1, apply_relu=True)
        y = depthwise3x3_bn_ref(y, *self.b2_dw, stride=self.stride)
        return pointwise_conv_bn_ref(y, *self.b2_pw2, apply_relu=True)

    def __call__(self, x_nchw, use_pallas=True):
        if use_pallas:
            if self.mode == 'basic':
                out = shuffle_unit_basic_pallas(
                    x_nchw, self.b2_pw1, self.b2_dw, self.b2_pw2)
            else:
                out = shuffle_unit_down_pallas(
                    x_nchw, self.b1_dw, self.b1_pw,
                    self.b2_pw1, self.b2_dw, self.b2_pw2)
        else:
            x = jnp.transpose(x_nchw, (0, 2, 3, 1))
            if self.mode == 'basic':
                x1, x2 = jnp.split(x, 2, axis=-1)
                out = jnp.concatenate([x1, self._branch2_ref(x2)], axis=-1)
            else:
                out = jnp.concatenate(
                    [self._branch1_ref(x), self._branch2_ref(x)], axis=-1)
        # channel shuffle (groups=2) + NHWC -> NCHW: one fused XLA copy (the
        # NCHW transpose is required anyway for the torch layout).
        out = channel_shuffle_nhwc(out, 2)
        return jnp.transpose(out, (0, 3, 1, 2))


# ----------------------------------- main ------------------------------------

if __name__ == "__main__":
    key = jax.random.PRNGKey(0)
    kx, kp1, kp2, kxs = jax.random.split(key, 4)

    # Channel width >= 8 so the MXU 1x1 path is exercised; still small shapes.
    x = jax.random.normal(kx, (2, 16, 16, 16), jnp.float32)    # NCHW

    # The MXU matmul may use bf16 passes depending on backend precision; the
    # loose tolerance still catches any structural/indexing error (O(0.1+)).
    TOL = 2e-2

    # basic mode: shuffle_unit(in_dim=16, out_dim=16, stride=1)
    unit = ShuffleUnit(16, 16, 1, kp1)
    out = unit(x, use_pallas=True)
    jax.block_until_ready(out)
    ref = unit(x, use_pallas=False)
    assert out.shape == (2, 16, 16, 16), out.shape
    assert bool(jnp.allclose(out, ref, atol=TOL, rtol=TOL)), \
        float(jnp.max(jnp.abs(out - ref)))

    # downsample mode: shuffle_unit(in_dim=16, out_dim=32, stride=2)
    unit_ds = ShuffleUnit(16, 32, 2, kp2)
    out_ds = unit_ds(x, use_pallas=True)
    jax.block_until_ready(out_ds)
    ref_ds = unit_ds(x, use_pallas=False)
    assert out_ds.shape == (2, 32, 8, 8), out_ds.shape
    assert bool(jnp.allclose(out_ds, ref_ds, atol=TOL, rtol=TOL)), \
        float(jnp.max(jnp.abs(out_ds - ref_ds)))

    # tiny-channel case: exercises the exact VPU fallback (Cin < 8) path.
    x_s = jax.random.normal(kxs, (2, 4, 16, 16), jnp.float32)
    unit_s = ShuffleUnit(4, 4, 1, kp1)
    out_s = unit_s(x_s, use_pallas=True)
    jax.block_until_ready(out_s)
    ref_s = unit_s(x_s, use_pallas=False)
    assert out_s.shape == (2, 4, 16, 16), out_s.shape
    assert bool(jnp.allclose(out_s, ref_s, atol=1e-4, rtol=1e-4)), \
        float(jnp.max(jnp.abs(out_s - ref_s)))

    print("KERNEL_OK")
</pallas_src>

<mosaic_0001>
module attributes {stable_mosaic.version = 11 : i64} {
  func.func @_basic_kernel(%arg0: i32, %arg1: memref<1x16x16x16xf32, #tpu.memory_space<vmem>>, %arg2: memref<8x8xf32, #tpu.memory_space<vmem>>, %arg3: memref<2x8xf32, #tpu.memory_space<vmem>>, %arg4: memref<11x8xf32, #tpu.memory_space<vmem>>, %arg5: memref<8x8xf32, #tpu.memory_space<vmem>>, %arg6: memref<2x8xf32, #tpu.memory_space<vmem>>, %arg7: memref<1x16x16x16xf32, #tpu.memory_space<vmem>>, %arg8: memref<18x25x8xf32, #tpu.memory_space<vmem>>) attributes {dimension_semantics = [#tpu.dimension_semantics<parallel>], iteration_bounds = array<i64: 2>, scalar_prefetch = 0 : i64, scratch_operands = 1 : i64, tpu.core_type = #tpu.core_type<tc>, window_params = [{transform_indices = @transform_0, window_bounds = array<i64: 1, 16, 16, 16>}, {pipeline_mode = #tpu.pipeline_mode<synchronous>, transform_indices = @transform_1, window_bounds = array<i64: 8, 8>}, {pipeline_mode = #tpu.pipeline_mode<synchronous>, transform_indices = @transform_2, window_bounds = array<i64: 2, 8>}, {pipeline_mode = #tpu.pipeline_mode<synchronous>, transform_indices = @transform_3, window_bounds = array<i64: 11, 8>}, {pipeline_mode = #tpu.pipeline_mode<synchronous>, transform_indices = @transform_4, window_bounds = array<i64: 8, 8>}, {pipeline_mode = #tpu.pipeline_mode<synchronous>, transform_indices = @transform_5, window_bounds = array<i64: 2, 8>}, {transform_indices = @transform_6, window_bounds = array<i64: 1, 16, 16, 16>}]} {
    %c0 = arith.constant 0 : index
    %c0_0 = arith.constant 0 : index
    %c0_1 = arith.constant 0 : index
    %c0_2 = arith.constant 0 : index
    %0 = vector.load %arg1[%c0, %c0_0, %c0_1, %c0_2] : memref<1x16x16x16xf32, #tpu.memory_space<vmem>>, vector<1x16x16x16xf32>
    %1 = vector.shape_cast %0 : vector<1x16x16x16xf32> to vector<16x16x16xf32>
    %2 = vector.extract_strided_slice %1 {offsets = [0, 0, 0], sizes = [16, 16, 8], strides = [1, 1, 1]} : vector<16x16x16xf32> to vector<16x16x8xf32>
    %3 = vector.extract_strided_slice %1 {offsets = [0, 0, 8], sizes = [16, 16, 8], strides = [1, 1, 1]} : vector<16x16x16xf32> to vector<16x16x8xf32>
    %c0_3 = arith.constant 0 : index
    %c0_4 = arith.constant 0 : index
    %4 = vector.load %arg2[%c0_3, %c0_4] : memref<8x8xf32, #tpu.memory_space<vmem>>, vector<8x8xf32>
    %c0_5 = arith.constant 0 : index
    %c0_6 = arith.constant 0 : index
    %5 = vector.load %arg3[%c0_5, %c0_6] : memref<2x8xf32, #tpu.memory_space<vmem>>, vector<1x8xf32>
    %6 = vector.shape_cast %5 : vector<1x8xf32> to vector<8xf32>
    %c1 = arith.constant 1 : index
    %c0_7 = arith.constant 0 : index
    %7 = vector.load %arg3[%c1, %c0_7] : memref<2x8xf32, #tpu.memory_space<vmem>>, vector<1x8xf32>
    %8 = vector.shape_cast %7 : vector<1x8xf32> to vector<8xf32>
    %9 = vector.shape_cast %3 : vector<16x16x8xf32> to vector<256x8xf32>
    %cst = arith.constant dense<0.000000e+00> : vector<256x8xf32>
    %10 = tpu.matmul %9, %4, %cst {dimension_numbers = #tpu.dot_dimension_numbers<[1], [0], [0], [1], [0, 0, 1, 1], [], []>} : vector<256x8xf32>, vector<8x8xf32>, vector<256x8xf32> -> vector<256x8xf32>
    %11 = vector.shape_cast %10 : vector<256x8xf32> to vector<16x16x8xf32>
    %12 = vector.shape_cast %6 : vector<8xf32> to vector<1x1x8xf32>
    %13 = vector.broadcast %12 : vector<1x1x8xf32> to vector<16x16x8xf32>
    %14 = arith.mulf %11, %13 : vector<16x16x8xf32>
    %15 = vector.shape_cast %8 : vector<8xf32> to vector<1x1x8xf32>
    %16 = vector.broadcast %15 : vector<1x1x8xf32> to vector<16x16x8xf32>
    %17 = arith.addf %14, %16 : vector<16x16x8xf32>
    %cst_8 = arith.constant 0.000000e+00 : f32
    %18 = vector.broadcast %cst_8 : f32 to vector<16x16x8xf32>
    %19 = arith.maximumf %17, %18 : vector<16x16x8xf32>
    %c0_9 = arith.constant 0 : index
    %c0_10 = arith.constant 0 : index
    %20 = vector.load %arg4[%c0_9, %c0_10] : memref<11x8xf32, #tpu.memory_space<vmem>>, vector<11x8xf32>
    %cst_11 = arith.constant 0.000000e+00 : f32
    %21 = vector.broadcast %cst_11 : f32 to vector<1x25x8xf32>
    %cst_12 = arith.constant 0.000000e+00 : f32
    %22 = vector.broadcast %cst_12 : f32 to vector<18x1x8xf32>
    %c0_13 = arith.constant 0 : index
    %c0_14 = arith.constant 0 : index
    %c0_15 = arith.constant 0 : index
    %23 = vector.load %arg8[%c0_13, %c0_14, %c0_15] : memref<18x25x8xf32, #tpu.memory_space<vmem>>, vector<1x25x8xf32>
    tpu.vector_store %arg8[%c0_13, %c0_14, %c0_15], %21 {strides = array<i32>} : memref<18x25x8xf32, #tpu.memory_space<vmem>>, vector<1x25x8xf32>,
    %c17 = arith.constant 17 : index
    %c0_16 = arith.constant 0 : index
    %c0_17 = arith.constant 0 : index
    %24 = vector.load %arg8[%c17, %c0_16, %c0_17] : memref<18x25x8xf32, #tpu.memory_space<vmem>>, vector<1x25x8xf32>
    tpu.vector_store %arg8[%c17, %c0_16, %c0_17], %21 {strides = array<i32>} : memref<18x25x8xf32, #tpu.memory_space<vmem>>, vector<1x25x8xf32>,
    %c0_18 = arith.constant 0 : index
    %c7 = arith.constant 7 : index
    %c0_19 = arith.constant 0 : index
    %25 = vector.load %arg8[%c0_18, %c7, %c0_19] : memref<18x25x8xf32, #tpu.memory_space<vmem>>, vector<18x1x8xf32>
    tpu.vector_store %arg8[%c0_18, %c7, %c0_19], %22 {strides = array<i32>} : memref<18x25x8xf32, #tpu.memory_space<vmem>>, vector<18x1x8xf32>,
    %c0_20 = arith.constant 0 : index
    %c24 = arith.constant 24 : index
    %c0_21 = arith.constant 0 : index
    %26 = vector.load %arg8[%c0_20, %c24, %c0_21] : memref<18x25x8xf32, #tpu.memory_space<vmem>>, vector<18x1x8xf32>
    tpu.vector_store %arg8[%c0_20, %c24, %c0_21], %22 {strides = array<i32>} : memref<18x25x8xf32, #tpu.memory_space<vmem>>, vector<18x1x8xf32>,
    %c1_22 = arith.constant 1 : index
    %c8 = arith.constant 8 : index
    %c0_23 = arith.constant 0 : index
    %27 = vector.load %arg8[%c1_22, %c8, %c0_23] : memref<18x25x8xf32, #tpu.memory_space<vmem>>, vector<16x16x8xf32>
    tpu.vector_store %arg8[%c1_22, %c8, %c0_23], %19 {strides = array<i32>} : memref<18x25x8xf32, #tpu.memory_space<vmem>>, vector<16x16x8xf32>,
    %c0_24 = arith.constant 0 : index
    %c7_25 = arith.constant 7 : index
    %c0_26 = arith.constant 0 : index
    %28 = vector.load %arg8[%c0_24, %c7_25, %c0_26] : memref<18x25x8xf32, #tpu.memory_space<vmem>>, vector<16x16x8xf32>
    %29 = vector.extract_strided_slice %20 {offsets = [0, 0], sizes = [1, 8], strides = [1, 1]} : vector<11x8xf32> to vector<1x8xf32>
    %30 = vector.shape_cast %29 : vector<1x8xf32> to vector<8xf32>
    %31 = vector.shape_cast %30 : vector<8xf32> to vector<1x1x8xf32>
    %32 = vector.broadcast %31 : vector<1x1x8xf32> to vector<16x16x8xf32>
    %33 = arith.mulf %28, %32 : vector<16x16x8xf32>
    %c0_27 = arith.constant 0 : index
    %c8_28 = arith.constant 8 : index
    %c0_29 = arith.constant 0 : index
    %34 = vector.load %arg8[%c0_27, %c8_28, %c0_29] : memref<18x25x8xf32, #tpu.memory_space<vmem>>, vector<16x16x8xf32>
    %35 = vector.extract_strided_slice %20 {offsets = [1, 0], sizes = [1, 8], strides = [1, 1]} : vector<11x8xf32> to vector<1x8xf32>
    %36 = vector.shape_cast %35 : vector<1x8xf32> to vector<8xf32>
    %37 = vector.shape_cast %36 : vector<8xf32> to vector<1x1x8xf32>
    %38 = vector.broadcast %37 : vector<1x1x8xf32> to vector<16x16x8xf32>
    %39 = arith.mulf %34, %38 : vector<16x16x8xf32>
    %40 = arith.addf %33, %39 : vector<16x16x8xf32>
    %c0_30 = arith.constant 0 : index
    %c9 = arith.constant 9 : index
    %c0_31 = arith.constant 0 : index
    %41 = vector.load %arg8[%c0_30, %c9, %c0_31] : memref<18x25x8xf32, #tpu.memory_space<vmem>>, vector<16x16x8xf32>
    %42 = vector.extract_strided_slice %20 {offsets = [2, 0], sizes = [1, 8], strides = [1, 1]} : vector<11x8xf32> to vector<1x8xf32>
    %43 = vector.shape_cast %42 : vector<1x8xf32> to vector<8xf32>
    %44 = vector.shape_cast %43 : vector<8xf32> to vector<1x1x8xf32>
    %45 = vector.broadcast %44 : vector<1x1x8xf32> to vector<16x16x8xf32>
    %46 = arith.mulf %41, %45 : vector<16x16x8xf32>
    %47 = arith.addf %40, %46 : vector<16x16x8xf32>
    %c1_32 = arith.constant 1 : index
    %c7_33 = arith.constant 7 : index
    %c0_34 = arith.constant 0 : index
    %48 = vector.load %arg8[%c1_32, %c7_33, %c0_34] : memref<18x25x8xf32, #tpu.memory_space<vmem>>, vector<16x16x8xf32>
    %49 = vector.extract_strided_slice %20 {offsets = [3, 0], sizes = [1, 8], strides = [1, 1]} : vector<11x8xf32> to vector<1x8xf32>
    %50 = vector.shape_cast %49 : vector<1x8xf32> to vector<8xf32>
    %51 = vector.shape_cast %50 : vector<8xf32> to vector<1x1x8xf32>
    %52 = vector.broadcast %51 : vector<1x1x8xf32> to vector<16x16x8xf32>
    %53 = arith.mulf %48, %52 : vector<16x16x8xf32>
    %c1_35 = arith.constant 1 : index
    %c8_36 = arith.constant 8 : index
    %c0_37 = arith.constant 0 : index
    %54 = vector.load %arg8[%c1_35, %c8_36, %c0_37] : memref<18x25x8xf32, #tpu.memory_space<vmem>>, vector<16x16x8xf32>
    %55 = vector.extract_strided_slice %20 {offsets = [4, 0], sizes = [1, 8], strides = [1, 1]} : vector<11x8xf32> to vector<1x8xf32>
    %56 = vector.shape_cast %55 : vector<1x8xf32> to vector<8xf32>
    %57 = vector.shape_cast %56 : vector<8xf32> to vector<1x1x8xf32>
    %58 = vector.broadcast %57 : vector<1x1x8xf32> to vector<16x16x8xf32>
    %59 = arith.mulf %54, %58 : vector<16x16x8xf32>
    %60 = arith.addf %53, %59 : vector<16x16x8xf32>
    %c1_38 = arith.constant 1 : index
    %c9_39 = arith.constant 9 : index
    %c0_40 = arith.constant 0 : index
    %61 = vector.load %arg8[%c1_38, %c9_39, %c0_40] : memref<18x25x8xf32, #tpu.memory_space<vmem>>, vector<16x16x8xf32>
    %62 = vector.extract_strided_slice %20 {offsets = [5, 0], sizes = [1, 8], strides = [1, 1]} : vector<11x8xf32> to vector<1x8xf32>
    %63 = vector.shape_cast %62 : vector<1x8xf32> to vector<8xf32>
    %64 = vector.shape_cast %63 : vector<8xf32> to vector<1x1x8xf32>
    %65 = vector.broadcast %64 : vector<1x1x8xf32> to vector<16x16x8xf32>
    %66 = arith.mulf %61, %65 : vector<16x16x8xf32>
    %67 = arith.addf %60, %66 : vector<16x16x8xf32>
    %c2 = arith.constant 2 : index
    %c7_41 = arith.constant 7 : index
    %c0_42 = arith.constant 0 : index
    %68 = vector.load %arg8[%c2, %c7_41, %c0_42] : memref<18x25x8xf32, #tpu.memory_space<vmem>>, vector<16x16x8xf32>
    %69 = vector.extract_strided_slice %20 {offsets = [6, 0], sizes = [1, 8], strides = [1, 1]} : vector<11x8xf32> to vector<1x8xf32>
    %70 = vector.shape_cast %69 : vector<1x8xf32> to vector<8xf32>
    %71 = vector.shape_cast %70 : vector<8xf32> to vector<1x1x8xf32>
    %72 = vector.broadcast %71 : vector<1x1x8xf32> to vector<16x16x8xf32>
    %73 = arith.mulf %68, %72 : vector<16x16x8xf32>
    %c2_43 = arith.constant 2 : index
    %c8_44 = arith.constant 8 : index
    %c0_45 = arith.constant 0 : index
    %74 = vector.load %arg8[%c2_43, %c8_44, %c0_45] : memref<18x25x8xf32, #tpu.memory_space<vmem>>, vector<16x16x8xf32>
    %75 = vector.extract_strided_slice %20 {offsets = [7, 0], sizes = [1, 8], strides = [1, 1]} : vector<11x8xf32> to vector<1x8xf32>
    %76 = vector.shape_cast %75 : vector<1x8xf32> to vector<8xf32>
    %77 = vector.shape_cast %76 : vector<8xf32> to vector<1x1x8xf32>
    %78 = vector.broadcast %77 : vector<1x1x8xf32> to vector<16x16x8xf32>
    %79 = arith.mulf %74, %78 : vector<16x16x8xf32>
    %80 = arith.addf %73, %79 : vector<16x16x8xf32>
    %c2_46 = arith.constant 2 : index
    %c9_47 = arith.constant 9 : index
    %c0_48 = arith.constant 0 : index
    %81 = vector.load %arg8[%c2_46, %c9_47, %c0_48] : memref<18x25x8xf32, #tpu.memory_space<vmem>>, vector<16x16x8xf32>
    %82 = vector.extract_strided_slice %20 {offsets = [8, 0], sizes = [1, 8], strides = [1, 1]} : vector<11x8xf32> to vector<1x8xf32>
    %83 = vector.shape_cast %82 : vector<1x8xf32> to vector<8xf32>
    %84 = vector.shape_cast %83 : vector<8xf32> to vector<1x1x8xf32>
    %85 = vector.broadcast %84 : vector<1x1x8xf32> to vector<16x16x8xf32>
    %86 = arith.mulf %81, %85 : vector<16x16x8xf32>
    %87 = arith.addf %80, %86 : vector<16x16x8xf32>
    %88 = arith.addf %47, %67 : vector<16x16x8xf32>
    %89 = arith.addf %88, %87 : vector<16x16x8xf32>
    %90 = vector.extract_strided_slice %20 {offsets = [9, 0], sizes = [1, 8], strides = [1, 1]} : vector<11x8xf32> to vector<1x8xf32>
    %91 = vector.shape_cast %90 : vector<1x8xf32> to vector<8xf32>
    %92 = vector.shape_cast %91 : vector<8xf32> to vector<1x1x8xf32>
    %93 = vector.broadcast %92 : vector<1x1x8xf32> to vector<16x16x8xf32>
    %94 = arith.mulf %89, %93 : vector<16x16x8xf32>
    %95 = vector.extract_strided_slice %20 {offsets = [10, 0], sizes = [1, 8], strides = [1, 1]} : vector<11x8xf32> to vector<1x8xf32>
    %96 = vector.shape_cast %95 : vector<1x8xf32> to vector<8xf32>
    %97 = vector.shape_cast %96 : vector<8xf32> to vector<1x1x8xf32>
    %98 = vector.broadcast %97 : vector<1x1x8xf32> to vector<16x16x8xf32>
    %99 = arith.addf %94, %98 : vector<16x16x8xf32>
    %c0_49 = arith.constant 0 : index
    %c0_50 = arith.constant 0 : index
    %100 = vector.load %arg5[%c0_49, %c0_50] : memref<8x8xf32, #tpu.memory_space<vmem>>, vector<8x8xf32>
    %c0_51 = arith.constant 0 : index
    %c0_52 = arith.constant 0 : index
    %101 = vector.load %arg6[%c0_51, %c0_52] : memref<2x8xf32, #tpu.memory_space<vmem>>, vector<1x8xf32>
    %102 = vector.shape_cast %101 : vector<1x8xf32> to vector<8xf32>
    %c1_53 = arith.constant 1 : index
    %c0_54 = arith.constant 0 : index
    %103 = vector.load %arg6[%c1_53, %c0_54] : memref<2x8xf32, #tpu.memory_space<vmem>>, vector<1x8xf32>
    %104 = vector.shape_cast %103 : vector<1x8xf32> to vector<8xf32>
    %105 = vector.shape_cast %99 : vector<16x16x8xf32> to vector<256x8xf32>
    %cst_55 = arith.constant dense<0.000000e+00> : vector<256x8xf32>
    %106 = tpu.matmul %105, %100, %cst_55 {dimension_numbers = #tpu.dot_dimension_numbers<[1], [0], [0], [1], [0, 0, 1, 1], [], []>} : vector<256x8xf32>, vector<8x8xf32>, vector<256x8xf32> -> vector<256x8xf32>
    %107 = vector.shape_cast %106 : vector<256x8xf32> to vector<16x16x8xf32>
    %108 = vector.shape_cast %102 : vector<8xf32> to vector<1x1x8xf32>
    %109 = vector.broadcast %108 : vector<1x1x8xf32> to vector<16x16x8xf32>
    %110 = arith.mulf %107, %109 : vector<16x16x8xf32>
    %111 = vector.shape_cast %104 : vector<8xf32> to vector<1x1x8xf32>
    %112 = vector.broadcast %111 : vector<1x1x8xf32> to vector<16x16x8xf32>
    %113 = arith.addf %110, %112 : vector<16x16x8xf32>
    %cst_56 = arith.constant 0.000000e+00 : f32
    %114 = vector.broadcast %cst_56 : f32 to vector<16x16x8xf32>
    %115 = arith.maximumf %113, %114 : vector<16x16x8xf32>
    %116 = tpu.concatenate %2, %115 in 2 : vector<16x16x8xf32>, vector<16x16x8xf32> -> vector<16x16x16xf32>
    %c0_57 = arith.constant 0 : index
    %c0_58 = arith.constant 0 : index
    %c0_59 = arith.constant 0 : index
    %c0_60 = arith.constant 0 : index
    %117 = vector.load %arg7[%c0_57, %c0_58, %c0_59, %c0_60] : memref<1x16x16x16xf32, #tpu.memory_space<vmem>>, vector<1x16x16x16xf32>
    %118 = vector.shape_cast %117 : vector<1x16x16x16xf32> to vector<16x16x16xf32>
    %119 = vector.shape_cast %116 : vector<16x16x16xf32> to vector<1x16x16x16xf32>
    tpu.vector_store %arg7[%c0_57, %c0_58, %c0_59, %c0_60], %119 {strides = array<i32>} : memref<1x16x16x16xf32, #tpu.memory_space<vmem>>, vector<1x16x16x16xf32>,
    return
  }
  func.func @transform_0(%arg0: i32) -> (i32, i32, i32, i32) {
    %c0_i32 = arith.constant 0 : i32
    %c0_i32_0 = arith.constant 0 : i32
    %c0_i32_1 = arith.constant 0 : i32
    %c0_i32_2 = arith.constant 0 : i32
    return %arg0, %c0_i32, %c0_i32_0, %c0_i32_1 : i32, i32, i32, i32
  }
  func.func @transform_1(%arg0: i32) -> (i32, i32) {
    %c0_i32 = arith.constant 0 : i32
    %c0_i32_0 = arith.constant 0 : i32
    %c0_i32_1 = arith.constant 0 : i32
    return %c0_i32, %c0_i32_0 : i32, i32
  }
  func.func @transform_2(%arg0: i32) -> (i32, i32) {
    %c0_i32 = arith.constant 0 : i32
    %c0_i32_0 = arith.constant 0 : i32
    %c0_i32_1 = arith.constant 0 : i32
    return %c0_i32, %c0_i32_0 : i32, i32
  }
  func.func @transform_3(%arg0: i32) -> (i32, i32) {
    %c0_i32 = arith.constant 0 : i32
    %c0_i32_0 = arith.constant 0 : i32
    %c0_i32_1 = arith.constant 0 : i32
    return %c0_i32, %c0_i32_0 : i32, i32
  }
  func.func @transform_4(%arg0: i32) -> (i32, i32) {
    %c0_i32 = arith.constant 0 : i32
    %c0_i32_0 = arith.constant 0 : i32
    %c0_i32_1 = arith.constant 0 : i32
    return %c0_i32, %c0_i32_0 : i32, i32
  }
  func.func @transform_5(%arg0: i32) -> (i32, i32) {
    %c0_i32 = arith.constant 0 : i32
    %c0_i32_0 = arith.constant 0 : i32
    %c0_i32_1 = arith.constant 0 : i32
    return %c0_i32, %c0_i32_0 : i32, i32
  }
  func.func @transform_6(%arg0: i32) -> (i32, i32, i32, i32) {
    %c0_i32 = arith.constant 0 : i32
    %c0_i32_0 = arith.constant 0 : i32
    %c0_i32_1 = arith.constant 0 : i32
    %c0_i32_2 = arith.constant 0 : i32
    return %arg0, %c0_i32, %c0_i32_0, %c0_i32_1 : i32, i32, i32, i32
  }
}

</mosaic_0001>

<bundles_post_ra>
// kernel: tpu_custom_call.1
= control target key start
LH: loop header
LB: loop body
LE: loop exit
PB: predicated region body
PF: predicated region fallthrough
CT: control target
= control target key end

     0   :  { %11 = vsyncpa [#allocation4], 0  ;;  %s4545_s0 = inlined_call_operand.hbm [shape: f32[2,16,16,16], index: 0, kind: input, shape index: {}]   ;;  %s4546_s1 = inlined_call_operand.vmem [shape: f32[8,8], index: 1, kind: input, shape index: {}]   ;;  %s4547_s2 = inlined_call_operand.vmem [shape: f32[2,8], index: 2, kind: input, shape index: {}]   ;;  %s4548_s3 = inlined_call_operand.vmem [shape: f32[11,8], index: 3, kind: input, shape index: {}]   ;;  %s4549_s4 = inlined_call_operand.vmem [shape: f32[8,8], index: 4, kind: input, shape index: {}]   ;;  %s4550_s5 = inlined_call_operand.vmem [shape: f32[2,8], index: 5, kind: input, shape index: {}]   ;;  %s4551_s6 = inlined_call_operand.hbm [shape: f32[2,16,16,16], index: 6, kind: output, shape index: {}]  }
   0x1   :  { %13 = vsyncpa [#allocation4 + $0x1], 0 }
   0x2   :  { %14 = vsyncpa [#allocation5], 0 }
   0x3   :  { %16 = vsyncpa [#allocation5 + $0x1], 0  ;;  %s3002_s21 = smov 0   ;;  %s3004_s22 = smov 0  }
   0x4   :  { %s3006_s23 = smov 0   ;;  %s3008_s24 = smov 0  }
   0x5 LB: > { %s3023_s25 = sadd.s32 4294967295, %s2957_s24   ;;  %s2525_s26 = sadd.s32 4294967294, %s2957_s24   ;;  %s2957_s24 = sphi %s3008_s24, %s4564_s24   ;;  %s2953_s23 = sphi %s3006_s23, %s4563_s23   ;;  %s2949_s22 = sphi %s3004_s22, %s4562_s22   ;;  %s2945_s21 = sphi %s3002_s21, %s4561_s21  }
   0x6   : > { %s3027_s27 = sadd.s32 1, %s2957_s24   ;;  %s29_s28 = sadd.s32 1, %s2953_s23 }
   0x7   : > { %s26_s29 = ssub.s32 %s2957_s24, %s3027_s27  ;;  %p36_p0 = scmp.ne.s32.totalorder %s2953_s23, %s2949_s22 }
   0x8   : > { %p27_p1 = scmp.eq.s32.totalorder %s26_s29, 0  ;;  %p37_p2 = scmp.eq.s32.totalorder %s2957_s24, 0 }
   0x9   : > { %p42_p3 = scmp.ne.s32.totalorder %s2949_s22, %s2945_s21  ;;  %p43_p4 = scmp.eq.s32.totalorder %s3023_s25, 0 }
   0xa   : > { %s3039_s30 = scalar_select %p27_p1, %s2953_s23, %s29_s28  }
   0xb   : > { %p3041_p5 = por %p37_p2, %p36_p0  ;;  %p3045_p6 = por %p43_p4, %p42_p3 }
   0xc   : > { %p171_p7 = scmp.eq.s32.totalorder %s3023_s25, 1  ;;  %p177_p8 = scmp.eq.s32.totalorder %s2525_s26, 1 }
   0xd   : > { %p2787_p10 = scmp.lt.s32.totalorder %s2957_s24, 2  ;;  %s212_s11 = sand.u32 1, %s2953_s23  }
   0xe   : > { %p3052_p11 = por %p171_p7, %p36_p0  ;;  %p3056_p12 = por %p177_p8, %p42_p3 }
   0xf   : > { %s2607_s12 = sshll.u32 %s2957_s24, 12  ;;  %s2528_s13 = sshll.u32 %s212_s11, 8 }
  0x10   : > { %s4555_s9 = scalar_select %p3052_p11, 1, 0 }
  0x11   : > { %s4556_s10 = scalar_select %p3056_p12, 1, 0 }
  0x12   : > { %s3065_s16 = scalar_lea.hbm %s4545_s0, %s2607_s12  ;;  %s216_s17 = scalar_lea.vmem [#allocation3], %s2528_s13 }
  0x13   : > { %s223_s18 = sshll.u32 %s216_s17, 4  ;;  %p3069_p13 = pnand %p2787_p10, %p3041_p5  ;;  %s3073_s18 = int_to_ptr.vmem [resolvable:$true] %s223_s18 }
  0x14   : > { %s3075_s20 = scalar_lea.sflag [#allocation4], %s212_s11  ;;  %s2861_s26 = scalar_lea.hbm %s3065_s16, 4096 }
  0x15   : > { %p2862_p0 = scmp.ne.s32.totalorder %s3065_s16, %s2861_s26  ;;  %p2863_p1 = pneg %p3069_p13 }
  0x16   : > { %s2866_s7 = scalar_lea.hbm %s4545_s0, 8192  ;;  %p2867_p4 = scmp.lt.u32.totalorder %s3065_s16, %s4545_s0 }
  0x17   : > { %p2864_p2 = pnand %p2863_p1, %p2862_p0  ;;  %p2868_p5 = scmp.lt.u32.totalorder %s2866_s7, %s2861_s26 }
  0x18   : > { %p2870_p8 = scmp.lt.u32.totalorder %s2861_s26, %s3065_s16 }
  0x19   : > { %p2865_p3 = pneg %p2864_p2  ;;  %p2869_p7 = por %p2868_p5, %p2867_p4 }
  0x1b   : > { %p2871_p10 = por %p2870_p8, %p2869_p7 }
  0x1d   : > { %p2872_p9 = pnand %p2871_p10, %p2865_p3 }
  0x1f   : > { %2875 = shalt.err (!%p2872_p9)
}
  0x20   : > { %s2876_s11 = scalar_lea.vmem %s3073_s18, 4096  ;;  %s2959_s14 = smov [#allocation3]  }
  0x21   : > { %p2877_p0 = scmp.ne.s32.totalorder %s3073_s18, %s2876_s11  ;;  %s2881_s15 = sshll.u32 %s2959_s14, 4  ;;  %s2882_s15 = int_to_ptr.vmem [resolvable:$false] %s2881_s15 }
  0x22   : > { %s2883_s17 = scalar_lea.vmem %s2882_s15, 8192  ;;  %p2884_p11 = scmp.lt.s32.totalorder %s3073_s18, %s2882_s15 }
  0x23   : > { %p2879_p2 = pnand %p2877_p0, %p2863_p1  ;;  %p2885_p4 = scmp.lt.s32.totalorder %s2883_s17, %s2876_s11 }
  0x25   : > { %p2880_p12 = pneg %p2879_p2  ;;  %p2886_p5 = por %p2885_p4, %p2884_p11 }
  0x27   : > { %p2887_p7 = pnand %p2886_p5, %p2880_p12 }
  0x29   : > { %2890 = shalt.err (!%p2887_p7)
}
  0x2a   : > { %s2960_s26 = smov 128   ;;  %s2961_s28 = smov 8  }
  0x2b   : > { %2782 = dma.hbm_to_vmem [thread:$0]  (!%p3069_p13), %s3065_s16, 4096, %s3073_s18, %s3075_s20, %s2960_s26, %s2960_s26, %s2961_s28  }
  0x2c   : > { %p2531_p9 = scmp.ge.s32.totalorder %s2957_s24, 1  ;;  %p231_p1 = scmp.lt.s32.totalorder %s2957_s24, 3 }
  0x2e   : > { %p232_p3 = pnand %p2531_p9, %p231_p1 }
  0x2f   : > { %s3106_s29 = sand.u32 (!%p232_p3), 1, %s2949_s22  }
  0x30   : > { %235 = sbr.rel (%p232_p3) target bundleno = 931 (0x3a3), region = 44  ;;  %s2532_s7 = sshll.u32 (!%p232_p3), %s3106_s29, 8 }
  0x31   : > { %s238_s12 = scalar_lea.sflag (!%p232_p3), [#allocation4], %s3106_s29  ;;  %s3112_s13 = scalar_lea.vmem (!%p232_p3), [#allocation3], %s2532_s7 }
  0x37   : > { %2936 = dma.done.wait (%p3045_p6), %s238_s12, 4096  }
  0x38   : > { %2938 = vsyncadd (%p3045_p6), %s238_s12, 4294963200  ;;  %v270_v0 = vld [vmem:[%s3112_s13] sm:$0xff]  ;;  %v272_v1 = vld [vmem:[%s3112_s13 + $0x10] sm:$0xff]  ;;  %s2962_s16 = smov 120   ;;  %vm401_vm0 = vcmask 64512   ;;  %vm800_vm1 = vcmask 57344  }
  0x39   : > { %337 = vrot.lane.b32.xlu0 %v270_v0, %s2962_s16  ;;  %341 = vrot.lane.b32.xlu1 %v272_v1, %s2962_s16  ;;  %v271_v2 = vld [vmem:[%s3112_s13 + $0x8] sm:$0xff]  ;;  %v273_v3 = vld [vmem:[%s3112_s13 + $0x18] sm:$0xff]  ;;  %v2963_v1 = vmov 0.0   ;;  %s2964_s26 = smov 8   ;;  %vm2405_vm2 = vcmask 130048   ;;  %s4339_s28 = scalar_lea.vmem [#allocation6], %s2532_s7 }
  0x3a   : > { %v274_v4 = vld [vmem:[%s3112_s13 + $0x20] sm:$0xff]  ;;  %v275_v5 = vld [vmem:[%s3112_s13 + $0x28] sm:$0xff]  ;;  %v276_v6 = vld [vmem:[%s3112_s13 + $0x30] sm:$0xff]  ;;  %797 = vst.msk [vmem:[#allocation2] sm:$0xff] %vm401_vm0, %v2963_v1  ;;  %s2608_s7 = sshll.u32 %s3023_s25, 12  ;;  %s2452_s12 = sshll.u32 %s4339_s28, 4  ;;  %s4494_s12 = int_to_ptr.vmem [resolvable:$true] %s2452_s12 }
  0x3b   : > { %v277_v7 = vld [vmem:[%s3112_s13 + $0x38] sm:$0xff]  ;;  %v302_v8 = vld [vmem:[%s4546_s1] sm:$0xff]  ;;  %v279_v10 = vld [vmem:[%s3112_s13 + $0x48] sm:$0xff]  ;;  %798 = vst.msk [vmem:[#allocation2 + $0x8] sm:$0xff] %vm401_vm0, %v2963_v1  ;;  %s4490_s18 = scalar_lea.hbm %s4551_s6, %s2608_s7  ;;  %s2439_s25 = scalar_lea.sflag [#allocation5], %s3106_s29 }
  0x3c   : > { %2675 = vmatprep.subr.mxu0 %v302_v8  ;;  %v278_v9 = vld [vmem:[%s3112_s13 + $0x40] sm:$0xff]  ;;  %v280_v11 = vld [vmem:[%s3112_s13 + $0x50] sm:$0xff]  ;;  %v281_v12 = vld [vmem:[%s3112_s13 + $0x58] sm:$0xff]  ;;  %799 = vst.msk [vmem:[#allocation2 + $0x10] sm:$0xff] %vm401_vm0, %v2963_v1  ;;  %s2891_s19 = scalar_lea.vmem %s4494_s12, 4096  ;;  %p4558_p11 = scmp.ne.s32.totalorder %s4555_s9, 0 }
  0x3d   : > { %339 = vrot.lane.b32.xlu0 %v271_v2, %s2962_s16  ;;  %343 = vrot.lane.b32.xlu1 %v273_v3, %s2962_s16  ;;  %v282_v13 = vld [vmem:[%s3112_s13 + $0x60] sm:$0xff]  ;;  %v283_v14 = vld [vmem:[%s3112_s13 + $0x68] sm:$0xff]  ;;  %808 = vst.msk [vmem:[#allocation2 + $0x27] sm:$0x1] %vm800_vm1, %v2963_v1  ;;  %809 = vst.msk [vmem:[#allocation2 + $0x47] sm:$0x1] %vm800_vm1, %v2963_v1  ;;  %v908_v3 = vlaneseq  ;;  %p2892_p6 = scmp.ne.s32.totalorder %s4494_s12, %s2891_s19 }
  0x3e   : > { %2676 = vmatpush3.msra.mxu0 %v302_v8  ;;  %v284_v15 = vld [vmem:[%s3112_s13 + $0x70] sm:$0xff]  ;;  %v285_v16 = vld [vmem:[%s3112_s13 + $0x78] sm:$0xff]  ;;  %v286_v17 = vld [vmem:[%s3112_s13 + $0x80] sm:$0xff]  ;;  %801 = vst.msk [vmem:[#allocation2 + $0x18] sm:$0x1] %vm800_vm1, %v2963_v1  ;;  %s2965_s20 = smov [#allocation6]  }
  0x3f   : > { %v287_v18 = vld [vmem:[%s3112_s13 + $0x88] sm:$0xff]  ;;  %v288_v19 = vld [vmem:[%s3112_s13 + $0x90] sm:$0xff]  ;;  %v289_v20 = vld [vmem:[%s3112_s13 + $0x98] sm:$0xff]  ;;  %803 = vst.msk [vmem:[#allocation2 + $0x220] sm:$0xff] %vm401_vm0, %v2963_v1  ;;  %p2893_p12 = pnand %p2892_p6, %p4558_p11  ;;  %s2895_s11 = sshll.u32 %s2965_s20, 4  ;;  %s2896_s11 = int_to_ptr.vmem [resolvable:$false] %s2895_s11 }
  0x40   : > { %v290_v21 = vld [vmem:[%s3112_s13 + $0xa0] sm:$0xff]  ;;  %v291_v22 = vld [vmem:[%s3112_s13 + $0xa8] sm:$0xff]  ;;  %v292_v23 = vld [vmem:[%s3112_s13 + $0xb0] sm:$0xff]  ;;  %804 = vst.msk [vmem:[#allocation2 + $0x228] sm:$0xff] %vm401_vm0, %v2963_v1  ;;  %s2897_s14 = scalar_lea.vmem %s2896_s11, 8192  ;;  %p2898_p8 = scmp.lt.s32.totalorder %s4494_s12, %s2896_s11 }
  0x41   : > { %345 = vrot.lane.b32.xlu0 %v274_v4, %s2962_s16  ;;  %347 = vrot.lane.b32.xlu1 %v275_v5, %s2962_s16  ;;  %v293_v24 = vld [vmem:[%s3112_s13 + $0xb8] sm:$0xff]  ;;  %v294_v25 = vld [vmem:[%s3112_s13 + $0xc0] sm:$0xff]  ;;  %805 = vst.msk [vmem:[#allocation2 + $0x230] sm:$0xff] %vm401_vm0, %v2963_v1  ;;  %v3264_v4 = vshrl.u32 %v908_v3, 7  ;;  %p2894_p13 = pneg %p2893_p12  ;;  %p2899_p10 = scmp.lt.s32.totalorder %s2897_s14, %s2891_s19 }
  0x42   : > { %v295_v26 = vld [vmem:[%s3112_s13 + $0xc8] sm:$0xff]  ;;  %v296_v27 = vld [vmem:[%s3112_s13 + $0xd0] sm:$0xff]  ;;  %v297_v28 = vld [vmem:[%s3112_s13 + $0xd8] sm:$0xff]  ;;  %806 = vst.msk [vmem:[#allocation2 + $0x238] sm:$0x1] %vm800_vm1, %v2963_v1 }
  0x43   : > { %v298_v29 = vld [vmem:[%s3112_s13 + $0xe0] sm:$0xff]  ;;  %v299_v30 = vld [vmem:[%s3112_s13 + $0xe8] sm:$0xff]  ;;  %v300_v31 = vld [vmem:[%s3112_s13 + $0xf0] sm:$0xff]  ;;  %810 = vst.msk [vmem:[#allocation2 + $0x67] sm:$0x1] %vm800_vm1, %v2963_v1  ;;  %v910_v5 = vsub.s32 0, %v3264_v4  ;;  %p2900_p0 = por %p2899_p10, %p2898_p8 }
  0x44   : > { %v301_v32 = vld [vmem:[%s3112_s13 + $0xf8] sm:$0xff]  ;;  %811 = vst.msk [vmem:[#allocation2 + $0x87] sm:$0x1] %vm800_vm1, %v2963_v1  ;;  %812 = vst.msk [vmem:[#allocation2 + $0xa7] sm:$0x1] %vm800_vm1, %v2963_v1  ;;  %v1817_v2 = vld [vmem:[%s4549_s4] sm:$0xff] }
  0x45   : > { %349 = vrot.lane.b32.xlu0 %v276_v6, %s2962_s16  ;;  %351 = vrot.lane.b32.xlu1 %v277_v7, %s2962_s16  ;;  %813 = vst.msk [vmem:[#allocation2 + $0xc7] sm:$0x1] %vm800_vm1, %v2963_v1  ;;  %814 = vst.msk [vmem:[#allocation2 + $0xe7] sm:$0x1] %vm800_vm1, %v2963_v1  ;;  %v978_v6 = vsub.s32 1, %v3264_v4  ;;  %v795_v7 = vld [vmem:[%s4548_s3] sm:$0xff]  ;;  %p2901_p2 = pnand %p2900_p0, %p2894_p13 }
  0x46   : > { %815 = vst.msk [vmem:[#allocation2 + $0x107] sm:$0x1] %vm800_vm1, %v2963_v1  ;;  %816 = vst.msk [vmem:[#allocation2 + $0x127] sm:$0x1] %vm800_vm1, %v2963_v1  ;;  %2725 = vmatprep.subr.mxu1 %v1817_v2  ;;  %v3274_v8 = vld [vmem:[%s4547_s2] ss:$0 sm:$0xff] }
  0x47   : > { %817 = vst.msk [vmem:[#allocation2 + $0x147] sm:$0x1] %vm800_vm1, %v2963_v1  ;;  %818 = vst.msk [vmem:[#allocation2 + $0x167] sm:$0x1] %vm800_vm1, %v2963_v1  ;;  %2726 = vmatpush3.msra.mxu1 %v1817_v2 }
  0x48   : > { %819 = vst.msk [vmem:[#allocation2 + $0x187] sm:$0x1] %vm800_vm1, %v2963_v1  ;;  %820 = vst.msk [vmem:[#allocation2 + $0x1a7] sm:$0x1] %vm800_vm1, %v2963_v1 }
  0x49   : > { %353 = vrot.lane.b32.xlu0 %v278_v9, %s2962_s16  ;;  %355 = vrot.lane.b32.xlu1 %v279_v10, %s2962_s16  ;;  %821 = vst.msk [vmem:[#allocation2 + $0x1c7] sm:$0x1] %vm800_vm1, %v2963_v1  ;;  %822 = vst.msk [vmem:[#allocation2 + $0x1e7] sm:$0x1] %vm800_vm1, %v2963_v1  ;;  %v3279_v9 = vld [vmem:[%s4547_s2 + $0x1] ss:$0 sm:$0xff] }
  0x4a   : > { %823 = vst.msk [vmem:[#allocation2 + $0x207] sm:$0x1] %vm800_vm1, %v2963_v1  ;;  %826 = vst.msk [vmem:[#allocation2 + $0x38] sm:$0x1] %vm800_vm1, %v2963_v1 }
  0x4b   : > { %827 = vst.msk [vmem:[#allocation2 + $0x58] sm:$0x1] %vm800_vm1, %v2963_v1  ;;  %828 = vst.msk [vmem:[#allocation2 + $0x78] sm:$0x1] %vm800_vm1, %v2963_v1 }
  0x4c   : > { %829 = vst.msk [vmem:[#allocation2 + $0x98] sm:$0x1] %vm800_vm1, %v2963_v1  ;;  %830 = vst.msk [vmem:[#allocation2 + $0xb8] sm:$0x1] %vm800_vm1, %v2963_v1 }
  0x4d   : > { %357 = vrot.lane.b32.xlu0 %v280_v11, %s2962_s16  ;;  %359 = vrot.lane.b32.xlu1 %v281_v12, %s2962_s16  ;;  %831 = vst.msk [vmem:[#allocation2 + $0xd8] sm:$0x1] %vm800_vm1, %v2963_v1  ;;  %832 = vst.msk [vmem:[#allocation2 + $0xf8] sm:$0x1] %vm800_vm1, %v2963_v1  ;;  %v3281_v11 = vrot.slane %v795_v7, %v910_v5  ;;  %v3285_v12 = vrot.slane %v795_v7, %v978_v6 }
  0x4e   : > { %833 = vst.msk [vmem:[#allocation2 + $0x118] sm:$0x1] %vm800_vm1, %v2963_v1  ;;  %834 = vst.msk [vmem:[#allocation2 + $0x138] sm:$0x1] %vm800_vm1, %v2963_v1 }
  0x4f   : > { %835 = vst.msk [vmem:[#allocation2 + $0x158] sm:$0x1] %vm800_vm1, %v2963_v1  ;;  %836 = vst.msk [vmem:[#allocation2 + $0x178] sm:$0x1] %vm800_vm1, %v2963_v1 }
  0x50   : > { %837 = vst.msk [vmem:[#allocation2 + $0x198] sm:$0x1] %vm800_vm1, %v2963_v1  ;;  %838 = vst.msk [vmem:[#allocation2 + $0x1b8] sm:$0x1] %vm800_vm1, %v2963_v1 }
  0x51   : > { %361 = vrot.lane.b32.xlu0 %v282_v13, %s2962_s16  ;;  %363 = vrot.lane.b32.xlu1 %v283_v14, %s2962_s16  ;;  %839 = vst.msk [vmem:[#allocation2 + $0x1d8] sm:$0x1] %vm800_vm1, %v2963_v1  ;;  %840 = vst.msk [vmem:[#allocation2 + $0x1f8] sm:$0x1] %vm800_vm1, %v2963_v1 }
  0x52   : > { %841 = vst.msk [vmem:[#allocation2 + $0x218] sm:$0x1] %vm800_vm1, %v2963_v1  ;;  %807 = vst.msk [vmem:[#allocation2 + $0x7] sm:$0x1] %vm800_vm1, %v2963_v1 }
  0x53   : > { %824 = vst.msk [vmem:[#allocation2 + $0x227] sm:$0x1] %vm800_vm1, %v2963_v1  ;;  %825 = vst.msk [vmem:[#allocation2 + $0x18] sm:$0x1] %vm800_vm1, %v2963_v1 }
  0x54   : > { %842 = vst.msk [vmem:[#allocation2 + $0x238] sm:$0x1] %vm800_vm1, %v2963_v1 }
  0x55   : > { %365 = vrot.lane.b32.xlu0 %v284_v15, %s2962_s16  ;;  %367 = vrot.lane.b32.xlu1 %v285_v16, %s2962_s16  ;;  %v944_v16 = vld [vmem:[#allocation2 + $0x8] sm:$0xff] }
  0x59   : > { %369 = vrot.lane.b32.xlu0 %v286_v17, %s2962_s16  ;;  %371 = vrot.lane.b32.xlu1 %v287_v18, %s2962_s16  ;;  %v876_v15 = vld [vmem:[#allocation2 + $0x7] sm:$0xff]  ;;  %v1078_v18 = vsub.s32 2, %v3264_v4 }
  0x5d   : > { %373 = vrot.lane.b32.xlu0 %v288_v19, %s2962_s16  ;;  %375 = vrot.lane.b32.xlu1 %v289_v20, %s2962_s16  ;;  %v877_v19 = vld [vmem:[#allocation2 + $0xf] sm:$0xff] }
  0x5e   : > { %v945_v20 = vld [vmem:[#allocation2 + $0x10] sm:$0xff] }
  0x61   : > { %377 = vrot.lane.b32.xlu0 %v290_v21, %s2962_s16  ;;  %379 = vrot.lane.b32.xlu1 %v291_v22, %s2962_s16 }
  0x65   : > { %381 = vrot.lane.b32.xlu0 %v292_v23, %s2962_s16  ;;  %383 = vrot.lane.b32.xlu1 %v293_v24, %s2962_s16  ;;  %v912_v24 = vmul.f32 %v3281_v11, %v876_v15 }
  0x69   : > { %385 = vrot.lane.b32.xlu0 %v294_v25, %s2962_s16  ;;  %387 = vrot.lane.b32.xlu1 %v295_v26, %s2962_s16  ;;  %v980_v25 = vmul.f32 %v3285_v12, %v944_v16 }
  0x6d   : > { %389 = vrot.lane.b32.xlu0 %v296_v27, %s2962_s16  ;;  %391 = vrot.lane.b32.xlu1 %v297_v28, %s2962_s16 }
  0x71   : > { %393 = vrot.lane.b32.xlu0 %v298_v29, %s2962_s16  ;;  %395 = vrot.lane.b32.xlu1 %v299_v30, %s2962_s16  ;;  %v1044_v29 = vld [vmem:[#allocation2 + $0x9] sm:$0xff]  ;;  %v913_v30 = vmul.f32 %v3281_v11, %v877_v19 }
  0x75   : > { %397 = vrot.lane.b32.xlu0 %v300_v31, %s2962_s16  ;;  %399 = vrot.lane.b32.xlu1 %v301_v32, %s2962_s16  ;;  %v981_v31 = vmul.f32 %v3285_v12, %v945_v20 }
  0xab   : > { %v338_v33 = vpop.permute.xlu0 %337  ;;  %v342_v34 = vpop.permute.xlu1 %341 }
  0xac   : > { %2677 = vmatprep.mubr.msk.f32.mxu0 %vm401_vm0, %v338_v33 }
  0xaf   : > { %v340_v35 = vpop.permute.xlu0 %339  ;;  %v344_v36 = vpop.permute.xlu1 %343 }
  0xb0   : > { %2678 = vmatmul.mubr.msk.f32.vlgmr.msra.gmra.mrb[0].mxu0 %vm401_vm0, %v340_v35  ;;  %v1246_v35 = vsub.s32 4, %v3264_v4 }
  0xb1   : > { %2680 = vmatprep.mubr.msk.f32.mxu0 %vm401_vm0, %v342_v34  ;;  %v3298_v34 = vrot.slane %v795_v7, %v1078_v18 }
  0xb3   : > { %v346_v37 = vpop.permute.xlu0 %345  ;;  %v348_v38 = vpop.permute.xlu1 %347 }
  0xb4   : > { %2681 = vmatmul.mubr.msk.f32.gmra.mrb[2].mxu0 %vm401_vm0, %v344_v36  ;;  %v1045_v36 = vld [vmem:[#allocation2 + $0x11] sm:$0xff] }
  0xb5   : > { %2683 = vmatprep.mubr.msk.f32.mxu0 %vm401_vm0, %v346_v37 }
  0xb7   : > { %v350_v39 = vpop.permute.xlu0 %349  ;;  %v352_v40 = vpop.permute.xlu1 %351 }
  0xb8   : > { %2684 = vmatmul.mubr.msk.f32.gmra.mrb[4].mxu0 %vm401_vm0, %v348_v38  ;;  %v1178_v38 = vsub.s32 3, %v3264_v4 }
  0xb9   : > { %2686 = vmatprep.mubr.msk.f32.mxu0 %vm401_vm0, %v350_v39  ;;  %v1346_v39 = vsub.s32 5, %v3264_v4 }
  0xbb   : > { %v354_v41 = vpop.permute.xlu0 %353  ;;  %v356_v42 = vpop.permute.xlu1 %355 }
  0xbc   : > { %2687 = vmatmul.mubr.msk.f32.gmra.mrb[6].mxu0 %vm401_vm0, %v352_v40  ;;  %v1515_v40 = vsub.s32 7, %v3264_v4 }
  0xbd   : > { %2689 = vmatprep.mubr.msk.f32.mxu0 %vm401_vm0, %v354_v41 }
  0xbf   : > { %v358_v43 = vpop.permute.xlu0 %357  ;;  %v360_v44 = vpop.permute.xlu1 %359 }
  0xc0   : > { %2690 = vmatmul.mubr.msk.f32.gmra.mrb[8].mxu0 %vm401_vm0, %v356_v42 }
  0xc1   : > { %2692 = vmatprep.mubr.msk.f32.mxu0 %vm401_vm0, %v358_v43  ;;  %v1012_v43 = vadd.f32 %v980_v25, %v912_v24 }
  0xc3   : > { %v362_v45 = vpop.permute.xlu0 %361  ;;  %v364_v46 = vpop.permute.xlu1 %363 }
  0xc4   : > { %2693 = vmatmul.mubr.msk.f32.gmra.mrb[10].mxu0 %vm401_vm0, %v360_v44  ;;  %v1080_v44 = vmul.f32 %v3298_v34, %v1044_v29 }
  0xc5   : > { %2695 = vmatprep.mubr.msk.f32.mxu0 %vm401_vm0, %v362_v45  ;;  %v1447_v45 = vsub.s32 6, %v3264_v4 }
  0xc6   : > { %v1112_v2 = vadd.f32 %v1080_v44, %v1012_v43 }
  0xc7   : > { %v366_v47 = vpop.permute.xlu0 %365  ;;  %v368_v48 = vpop.permute.xlu1 %367 }
  0xc8   : > { %2696 = vmatmul.mubr.msk.f32.gmra.mrb[12].mxu0 %vm401_vm0, %v364_v46 }
  0xc9   : > { %2698 = vmatprep.mubr.msk.f32.mxu0 %vm401_vm0, %v366_v47 }
  0xcb   : > { %v370_v49 = vpop.permute.xlu0 %369  ;;  %v372_v50 = vpop.permute.xlu1 %371 }
  0xcc   : > { %2699 = vmatmul.mubr.msk.f32.gmra.mrb[14].mxu0 %vm401_vm0, %v368_v48 }
  0xcd   : > { %2701 = vmatprep.mubr.msk.f32.mxu0 %vm401_vm0, %v370_v49  ;;  %v796_v49 = vld [vmem:[%s4548_s3 + $0x8] sm:$0x7] }
  0xce   : > { %v3338_v15 = vrot.slane %v796_v49, %v1078_v18 }
  0xcf   : > { %v374_v51 = vpop.permute.xlu0 %373  ;;  %v376_v52 = vpop.permute.xlu1 %375 }
  0xd0   : > { %2702 = vmatmul.mubr.msk.f32.gmra.mrb[16].mxu0 %vm401_vm0, %v372_v50  ;;  %v1013_v50 = vadd.f32 %v981_v31, %v913_v30 }
  0xd1   : > { %2704 = vmatprep.mubr.msk.f32.mxu0 %vm401_vm0, %v374_v51  ;;  %v1081_v51 = vmul.f32 %v3298_v34, %v1045_v36 }
  0xd3   : > { %v378_v53 = vpop.permute.xlu0 %377  ;;  %v380_v54 = vpop.permute.xlu1 %379  ;;  %v1113_v3 = vadd.f32 %v1081_v51, %v1013_v50 }
  0xd4   : > { %2705 = vmatmul.mubr.msk.f32.gmra.mrb[18].mxu0 %vm401_vm0, %v376_v52 }
  0xd5   : > { %2707 = vmatprep.mubr.msk.f32.mxu0 %vm401_vm0, %v378_v53 }
  0xd7   : > { %v382_v55 = vpop.permute.xlu0 %381  ;;  %v384_v56 = vpop.permute.xlu1 %383 }
  0xd8   : > { %2708 = vmatmul.mubr.msk.f32.gmra.mrb[20].mxu0 %vm401_vm0, %v380_v54 }
  0xd9   : > { %2710 = vmatprep.mubr.msk.f32.mxu0 %vm401_vm0, %v382_v55  ;;  %v3318_v55 = vrot.slane %v795_v7, %v1178_v38 }
  0xdb   : > { %v386_v57 = vpop.permute.xlu0 %385  ;;  %v388_v58 = vpop.permute.xlu1 %387 }
  0xdc   : > { %2711 = vmatmul.mubr.msk.f32.gmra.mrb[22].mxu0 %vm401_vm0, %v384_v56  ;;  %v3320_v56 = vrot.slane %v795_v7, %v1246_v35 }
  0xdd   : > { %2713 = vmatprep.mubr.msk.f32.mxu0 %vm401_vm0, %v386_v57  ;;  %v3322_v57 = vrot.slane %v795_v7, %v1346_v39 }
  0xdf   : > { %v390_v59 = vpop.permute.xlu0 %389  ;;  %v392_v60 = vpop.permute.xlu1 %391 }
  0xe0   : > { %2714 = vmatmul.mubr.msk.f32.gmra.mrb[24].mxu0 %vm401_vm0, %v388_v58 }
  0xe1   : > { %2716 = vmatprep.mubr.msk.f32.mxu0 %vm401_vm0, %v390_v59 }
  0xe3   : > { %v394_v61 = vpop.permute.xlu0 %393  ;;  %v396_v62 = vpop.permute.xlu1 %395 }
  0xe4   : > { %2717 = vmatmul.mubr.msk.f32.gmra.mrb[26].mxu0 %vm401_vm0, %v392_v60  ;;  %v3326_v60 = vrot.slane %v795_v7, %v1447_v45 }
  0xe5   : > { %2719 = vmatprep.mubr.msk.f32.mxu0 %vm401_vm0, %v394_v61  ;;  %v3328_v61 = vrot.slane %v795_v7, %v1515_v40 }
  0xe7   : > { %v398_v63 = vpop.permute.xlu0 %397  ;;  %v400_v0 = vpop.permute.xlu1 %399 }
  0xe8   : > { %2720 = vmatmul.mubr.msk.f32.gmra.mrb[28].mxu0 %vm401_vm0, %v396_v62  ;;  %v3330_v62 = vrot.slane %v796_v49, %v910_v5 }
  0xe9   : > { %2722 = vmatprep.mubr.msk.f32.mxu0 %vm401_vm0, %v398_v63 }
  0xec   : > { %2723 = vmatmul.mubr.msk.f32.gmra.mrb[30].mxu0 %vm401_vm0, %v400_v0 }
 0x183   : > { %v2679_v10 = vpop.f32.mrb[0].mxu0 }
 0x184   : > { %v696_v13 = vmul.f32 %v2679_v10, %v3274_v8  ;;  %v532_v14 = vpop.f32.mrb[1].mxu0 }
 0x185   : > { %v695_v17 = vmul.f32 %v3274_v8, %v532_v14  ;;  %v3336_v14 = vrot.slane %v796_v49, %v978_v6 }
 0x186   : > { %v732_v21 = vadd.f32 %v3279_v9, %v696_v13 }
 0x187   : > { %v731_v22 = vadd.f32 %v3279_v9, %v695_v17  ;;  %v2682_v23 = vpop.f32.mrb[2].mxu0 }
 0x188   : > { %v764_v26 = vmax.f32 %v732_v21, 0.0  ;;  %v698_v27 = vmul.f32 %v2682_v23, %v3274_v8  ;;  %v542_v28 = vpop.f32.mrb[3].mxu0 }
 0x189   : > { %v763_v32 = vmax.f32 %v731_v22, 0.0  ;;  %v697_v33 = vmul.f32 %v3274_v8, %v542_v28 }
 0x18a   : > { %845 = vst.msk [vmem:[#allocation2 + $0x30] sm:$0xff] %vm401_vm0, %v764_v26  ;;  %v734_v37 = vadd.f32 %v3279_v9, %v698_v27 }
 0x18b   : > { %844 = vst.msk [vmem:[#allocation2 + $0x28] sm:$0xff] %vm401_vm0, %v763_v32  ;;  %v733_v41 = vadd.f32 %v3279_v9, %v697_v33  ;;  %v2685_v42 = vpop.f32.mrb[4].mxu0 }
 0x18c   : > { %v766_v46 = vmax.f32 %v734_v37, 0.0  ;;  %v700_v47 = vmul.f32 %v2685_v42, %v3274_v8  ;;  %v552_v48 = vpop.f32.mrb[5].mxu0 }
 0x18d   : > { %v765_v52 = vmax.f32 %v733_v41, 0.0  ;;  %v699_v53 = vmul.f32 %v3274_v8, %v552_v48 }
 0x18e   : > { %847 = vst.msk [vmem:[#allocation2 + $0x50] sm:$0xff] %vm401_vm0, %v766_v46  ;;  %v736_v54 = vadd.f32 %v3279_v9, %v700_v47 }
 0x18f   : > { %846 = vst.msk [vmem:[#allocation2 + $0x48] sm:$0xff] %vm401_vm0, %v765_v52  ;;  %v735_v58 = vadd.f32 %v3279_v9, %v699_v53  ;;  %v2688_v59 = vpop.f32.mrb[6].mxu0 }
 0x190   : > { %v768_v63 = vmax.f32 %v736_v54, 0.0  ;;  %v702_v0 = vmul.f32 %v2688_v59, %v3274_v8  ;;  %v562_v1 = vpop.f32.mrb[7].mxu0 }
 0x191   : > { %v767_v10 = vmax.f32 %v735_v58, 0.0  ;;  %v701_v13 = vmul.f32 %v3274_v8, %v562_v1  ;;  %v1213_v16 = vld [vmem:[#allocation2 + $0x30] sm:$0xff] }
 0x192   : > { %v3340_v7 = vld [vmem:[#allocation2 + $0x31] sm:$0xff]  ;;  %849 = vst.msk [vmem:[#allocation2 + $0x70] sm:$0xff] %vm401_vm0, %v768_v63  ;;  %v738_v5 = vadd.f32 %v3279_v9, %v702_v0  ;;  %v1144_v17 = vld [vmem:[#allocation2 + $0x27] sm:$0xff]  ;;  %v1249_v21 = vmul.f32 %v3320_v56, %v1213_v16  ;;  %v3348_v4 = vmul.f32 %v1213_v16, %v3285_v12 }
 0x193   : > { %v1212_v19 = vld [vmem:[#allocation2 + $0x28] sm:$0xff]  ;;  %v1349_v22 = vmul.f32 %v3322_v57, %v3340_v7  ;;  %848 = vst.msk [vmem:[#allocation2 + $0x68] sm:$0xff] %vm401_vm0, %v767_v10  ;;  %v737_v6 = vadd.f32 %v3279_v9, %v701_v13  ;;  %v2691_v18 = vpop.f32.mrb[8].mxu0  ;;  %v1180_v23 = vmul.f32 %v3318_v55, %v1144_v17  ;;  %v914_v31 = vmul.f32 %v1144_v17, %v3281_v11 }
 0x194   : > { %v1312_v20 = vld [vmem:[#allocation2 + $0x29] sm:$0xff]  ;;  %v1248_v24 = vmul.f32 %v3320_v56, %v1212_v19  ;;  %v770_v27 = vmax.f32 %v738_v5, 0.0  ;;  %v704_v28 = vmul.f32 %v2691_v18, %v3274_v8  ;;  %v572_v29 = vpop.f32.mrb[9].mxu0  ;;  %v982_v38 = vmul.f32 %v1212_v19, %v3285_v12 }
 0x195   : > { %v1348_v25 = vmul.f32 %v3322_v57, %v1312_v20  ;;  %v3355_v26 = vld [vmem:[#allocation2 + $0x2f] sm:$0xff]  ;;  %v769_v32 = vmax.f32 %v737_v6, 0.0  ;;  %v703_v33 = vmul.f32 %v3274_v8, %v572_v29  ;;  %v1082_v6 = vmul.f32 %v1312_v20, %v3298_v34 }
 0x196   : > { %v1181_v30 = vmul.f32 %v3318_v55, %v3355_v26  ;;  %v1280_v35 = vadd.f32 %v1248_v24, %v1180_v23  ;;  %v3362_v36 = vld [vmem:[#allocation2 + $0x50] sm:$0xff]  ;;  %851 = vst.msk [vmem:[#allocation2 + $0x90] sm:$0xff] %vm401_vm0, %v770_v27  ;;  %v740_v39 = vadd.f32 %v3279_v9, %v704_v28  ;;  %v3369_v40 = vld [vmem:[#allocation2 + $0x47] sm:$0xff]  ;;  %v1014_v17 = vadd.f32 %v982_v38, %v914_v31 }
 0x197   : > { %v3364_v37 = vld [vmem:[#allocation2 + $0x51] sm:$0xff]  ;;  %v3371_v41 = vld [vmem:[#allocation2 + $0x48] sm:$0xff]  ;;  %v1518_v44 = vmul.f32 %v3328_v61, %v3362_v36  ;;  %850 = vst.msk [vmem:[#allocation2 + $0x88] sm:$0xff] %vm401_vm0, %v769_v32  ;;  %v739_v46 = vadd.f32 %v3279_v9, %v703_v33  ;;  %v2694_v47 = vpop.f32.mrb[10].mxu0  ;;  %v1449_v49 = vmul.f32 %v3326_v60, %v3369_v40 }
 0x198   : > { %v3373_v42 = vld [vmem:[#allocation2 + $0x49] sm:$0xff]  ;;  %v1281_v43 = vadd.f32 %v1249_v21, %v1181_v30  ;;  %v1618_v45 = vmul.f32 %v3330_v62, %v3364_v37  ;;  %v1380_v48 = vadd.f32 %v1348_v25, %v1280_v35  ;;  %v1517_v50 = vmul.f32 %v3328_v61, %v3371_v41  ;;  %v582_v54 = vpop.f32.mrb[11].mxu0 }
 0x199   : > { %v3385_v51 = vld [vmem:[#allocation2 + $0x4f] sm:$0xff]  ;;  %v772_v52 = vmax.f32 %v740_v39, 0.0  ;;  %v706_v53 = vmul.f32 %v2694_v47, %v3274_v8  ;;  %v1617_v58 = vmul.f32 %v3330_v62, %v3373_v42  ;;  %v771_v63 = vmax.f32 %v739_v46, 0.0 }
 0x19a   : > { %v1381_v59 = vadd.f32 %v1349_v22, %v1281_v43  ;;  %v705_v0 = vmul.f32 %v3274_v8, %v582_v54  ;;  %v1549_v1 = vadd.f32 %v1517_v50, %v1449_v49  ;;  %v1681_v10 = vadd.f32 %v1380_v48, %v1112_v2  ;;  %v3403_v27 = vld [vmem:[#allocation2 + $0x67] sm:$0xff] }
 0x19b   : > { %853 = vst.msk [vmem:[#allocation2 + $0xb0] sm:$0xff] %vm401_vm0, %v772_v52  ;;  %v742_v13 = vadd.f32 %v3279_v9, %v706_v53  ;;  %v1450_v16 = vmul.f32 %v3326_v60, %v3385_v51  ;;  %852 = vst.msk [vmem:[#allocation2 + $0xa8] sm:$0xff] %vm401_vm0, %v771_v63  ;;  %v2697_v21 = vpop.f32.mrb[12].mxu0  ;;  %v1182_v2 = vmul.f32 %v3369_v40, %v3318_v55  ;;  %v3405_v28 = vld [vmem:[#allocation2 + $0x68] sm:$0xff] }
 0x19c   : > { %v1682_v5 = vadd.f32 %v1381_v59, %v1113_v3  ;;  %v741_v19 = vadd.f32 %v3279_v9, %v705_v0  ;;  %v1649_v22 = vadd.f32 %v1617_v58, %v1549_v1  ;;  %v708_v23 = vmul.f32 %v2697_v21, %v3274_v8  ;;  %v592_v24 = vpop.f32.mrb[13].mxu0  ;;  %v3419_v48 = vld [vmem:[#allocation2 + $0x69] sm:$0xff] }
 0x19d   : > { %v774_v18 = vmax.f32 %v742_v13, 0.0  ;;  %v1550_v25 = vadd.f32 %v1518_v44, %v1450_v16  ;;  %v1250_v3 = vmul.f32 %v3371_v41, %v3320_v56  ;;  %v707_v30 = vmul.f32 %v3274_v8, %v592_v24 }
 0x19e   : > { %v773_v29 = vmax.f32 %v741_v19, 0.0  ;;  %v1713_v31 = vadd.f32 %v1681_v10, %v1649_v22  ;;  %v1114_v20 = vadd.f32 %v1082_v6, %v1014_v17  ;;  %v744_v32 = vadd.f32 %v3279_v9, %v708_v23  ;;  %v3438_v22 = vld [vmem:[#allocation2 + $0x6f] sm:$0xff] }
 0x19f   : > { %855 = vst.msk [vmem:[#allocation2 + $0xd0] sm:$0xff] %vm401_vm0, %v774_v18  ;;  %v1650_v33 = vadd.f32 %v1618_v45, %v1550_v25  ;;  %v1282_v35 = vadd.f32 %v1250_v3, %v1182_v2  ;;  %v1350_v38 = vmul.f32 %v3373_v42, %v3322_v57  ;;  %v743_v39 = vadd.f32 %v3279_v9, %v707_v30  ;;  %v2700_v43 = vpop.f32.mrb[14].mxu0  ;;  %v3442_v25 = vld [vmem:[#allocation2 + $0x70] sm:$0xff] }
 0x1a0   : > { %854 = vst.msk [vmem:[#allocation2 + $0xc8] sm:$0xff] %vm401_vm0, %v773_v29  ;;  %v1749_v44 = vmul.f32 %v3336_v14, %v1713_v31  ;;  %v1451_v46 = vmul.f32 %v3326_v60, %v3403_v27  ;;  %v1519_v47 = vmul.f32 %v3328_v61, %v3405_v28  ;;  %v776_v45 = vmax.f32 %v744_v32, 0.0  ;;  %v602_v50 = vpop.f32.mrb[15].mxu0  ;;  %v3448_v30 = vld [vmem:[#allocation2 + $0x71] sm:$0xff] }
 0x1a1   : > { %v710_v49 = vmul.f32 %v2700_v43, %v3274_v8  ;;  %v1714_v52 = vadd.f32 %v1682_v5, %v1650_v33  ;;  %v1382_v53 = vadd.f32 %v1350_v38, %v1282_v35  ;;  %v775_v54 = vmax.f32 %v743_v39, 0.0 }
 0x1a2   : > { %v709_v58 = vmul.f32 %v3274_v8, %v602_v50  ;;  %v1785_v59 = vadd.f32 %v3338_v15, %v1749_v44  ;;  %v1551_v63 = vadd.f32 %v1519_v47, %v1451_v46  ;;  %857 = vst.msk [vmem:[#allocation2 + $0xf0] sm:$0xff] %vm401_vm0, %v776_v45  ;;  %v1619_v10 = vmul.f32 %v3330_v62, %v3419_v48 }
 0x1a3   : > { %v746_v0 = vadd.f32 %v3279_v9, %v710_v49  ;;  %v1750_v1 = vmul.f32 %v3336_v14, %v1714_v52  ;;  %v1683_v13 = vadd.f32 %v1382_v53, %v1114_v20  ;;  %856 = vst.msk [vmem:[#allocation2 + $0xe8] sm:$0xff] %vm401_vm0, %v775_v54  ;;  %v2703_v5 = vpop.f32.mrb[16].mxu0  ;;  %v915_v17 = vmul.f32 %v3355_v26, %v3281_v11 }
 0x1a4   : > { %v745_v16 = vadd.f32 %v3279_v9, %v709_v58  ;;  %2727 = vmatprep.mubr.msk.f32.mxu1 %vm401_vm0, %v1785_v59  ;;  %v1083_v19 = vmul.f32 %v3340_v7, %v3298_v34  ;;  %v1183_v21 = vmul.f32 %v3385_v51, %v3318_v55  ;;  %v712_v2 = vmul.f32 %v2703_v5, %v3274_v8  ;;  %v612_v18 = vpop.f32.mrb[17].mxu0 }
 0x1a5   : > { %v778_v6 = vmax.f32 %v746_v0, 0.0  ;;  %v1786_v23 = vadd.f32 %v3338_v15, %v1750_v1  ;;  %v1651_v24 = vadd.f32 %v1619_v10, %v1551_v63  ;;  %v711_v26 = vmul.f32 %v3274_v8, %v612_v18 }
 0x1a6   : > { %v777_v3 = vmax.f32 %v745_v16, 0.0  ;;  %v1015_v29 = vadd.f32 %v3348_v4, %v915_v17  ;;  %v1251_v7 = vmul.f32 %v3362_v36, %v3320_v56  ;;  %v748_v31 = vadd.f32 %v3279_v9, %v712_v2  ;;  %v3477_v17 = vld [vmem:[#allocation2 + $0x87] sm:$0xff] }
 0x1a7   : > { %859 = vst.msk [vmem:[#allocation2 + $0x110] sm:$0xff] %vm401_vm0, %v778_v6  ;;  %2728 = vmatmul.mubr.msk.f32.vlgmr.msra.gmra.mrb[0].mxu1 %vm401_vm0, %v1786_v23  ;;  %v1715_v20 = vadd.f32 %v1683_v13, %v1651_v24  ;;  %v1351_v32 = vmul.f32 %v3364_v37, %v3322_v57  ;;  %v1452_v33 = vmul.f32 %v3326_v60, %v3438_v22  ;;  %v2706_v35 = vpop.f32.mrb[18].mxu0  ;;  %v3485_v2 = vld [vmem:[#allocation2 + $0x89] sm:$0xff] }
 0x1a8   : > { %858 = vst.msk [vmem:[#allocation2 + $0x108] sm:$0xff] %vm401_vm0, %v777_v3  ;;  %v747_v4 = vadd.f32 %v3279_v9, %v711_v26  ;;  %v1115_v38 = vadd.f32 %v1083_v19, %v1015_v29  ;;  %v1283_v39 = vadd.f32 %v1251_v7, %v1183_v21  ;;  %v1520_v43 = vmul.f32 %v3328_v61, %v3442_v25  ;;  %v622_v45 = vpop.f32.mrb[19].mxu0  ;;  %v3479_v19 = vld [vmem:[#allocation2 + $0x88] sm:$0xff] }
 0x1a9   : > { %v780_v44 = vmax.f32 %v748_v31, 0.0  ;;  %v714_v46 = vmul.f32 %v2706_v35, %v3274_v8  ;;  %v1751_v47 = vmul.f32 %v3336_v14, %v1715_v20  ;;  %v1620_v49 = vmul.f32 %v3330_v62, %v3448_v30 }
 0x1aa   : > { %v779_v50 = vmax.f32 %v747_v4, 0.0  ;;  %v713_v52 = vmul.f32 %v3274_v8, %v622_v45  ;;  %v1383_v53 = vadd.f32 %v1351_v32, %v1283_v39  ;;  %v1552_v54 = vadd.f32 %v1520_v43, %v1452_v33 }
 0x1ab   : > { %861 = vst.msk [vmem:[#allocation2 + $0x130] sm:$0xff] %vm401_vm0, %v780_v44  ;;  %v750_v58 = vadd.f32 %v3279_v9, %v714_v46  ;;  %v1787_v59 = vadd.f32 %v3338_v15, %v1751_v47  ;;  %v916_v63 = vmul.f32 %v3369_v40, %v3281_v11  ;;  %v984_v0 = vmul.f32 %v3371_v41, %v3285_v12  ;;  %v2709_v16 = vpop.f32.mrb[20].mxu0  ;;  %v3506_v46 = vld [vmem:[#allocation2 + $0x8f] sm:$0xff] }
 0x1ac   : > { %860 = vst.msk [vmem:[#allocation2 + $0x128] sm:$0xff] %vm401_vm0, %v779_v50  ;;  %v749_v1 = vadd.f32 %v3279_v9, %v713_v52  ;;  %v1652_v10 = vadd.f32 %v1620_v49, %v1552_v54  ;;  %v1684_v13 = vadd.f32 %v1383_v53, %v1115_v38  ;;  %v1084_v5 = vmul.f32 %v3373_v42, %v3298_v34  ;;  %v632_v18 = vpop.f32.mrb[21].mxu0  ;;  %v3512_v53 = vld [vmem:[#allocation2 + $0x90] sm:$0xff] }
 0x1ad   : > { %v782_v21 = vmax.f32 %v750_v58, 0.0  ;;  %2730 = vmatprep.mubr.msk.f32.mxu1 %vm401_vm0, %v1787_v59  ;;  %v716_v40 = vmul.f32 %v2709_v16, %v3274_v8  ;;  %v1016_v41 = vadd.f32 %v984_v0, %v916_v63  ;;  %v1184_v6 = vmul.f32 %v3403_v27, %v3318_v55  ;;  %v3514_v54 = vld [vmem:[#allocation2 + $0x91] sm:$0xff] }
 0x1ae   : > { %v781_v23 = vmax.f32 %v749_v1, 0.0  ;;  %v1716_v24 = vadd.f32 %v1684_v13, %v1652_v10  ;;  %v1252_v42 = vmul.f32 %v3405_v28, %v3320_v56  ;;  %v1352_v3 = vmul.f32 %v3419_v48, %v3322_v57 }
 0x1af   : > { %863 = vst.msk [vmem:[#allocation2 + $0x150] sm:$0xff] %vm401_vm0, %v782_v21  ;;  %v752_v26 = vadd.f32 %v3279_v9, %v716_v40  ;;  %v1116_v29 = vadd.f32 %v1084_v5, %v1016_v41  ;;  %v1453_v7 = vmul.f32 %v3326_v60, %v3477_v17  ;;  %v1521_v31 = vmul.f32 %v3328_v61, %v3479_v19  ;;  %v2712_v35 = vpop.f32.mrb[22].mxu0 }
 0x1b0   : > { %862 = vst.msk [vmem:[#allocation2 + $0x148] sm:$0xff] %vm401_vm0, %v781_v23  ;;  %v1752_v20 = vmul.f32 %v3336_v14, %v1716_v24  ;;  %v1284_v32 = vadd.f32 %v1252_v42, %v1184_v6  ;;  %v1621_v33 = vmul.f32 %v3330_v62, %v3485_v2  ;;  %v715_v4 = vmul.f32 %v3274_v8, %v632_v18  ;;  %v642_v47 = vpop.f32.mrb[23].mxu0  ;;  %v3540_v24 = vld [vmem:[#allocation2 + $0xa7] sm:$0xff] }
 0x1b1   : > { %v784_v38 = vmax.f32 %v752_v26, 0.0  ;;  %v1553_v39 = vadd.f32 %v1521_v31, %v1453_v7  ;;  %v917_v43 = vmul.f32 %v3385_v51, %v3281_v11  ;;  %v985_v44 = vmul.f32 %v3362_v36, %v3285_v12 }
 0x1b2   : > { %v1788_v45 = vadd.f32 %v3338_v15, %v1752_v20  ;;  %v1384_v49 = vadd.f32 %v1352_v3, %v1284_v32  ;;  %v751_v50 = vadd.f32 %v3279_v9, %v715_v4  ;;  %v1085_v52 = vmul.f32 %v3364_v37, %v3298_v34  ;;  %v3550_v32 = vld [vmem:[#allocation2 + $0xa8] sm:$0xff] }
 0x1b3   : > { %865 = vst.msk [vmem:[#allocation2 + $0x170] sm:$0xff] %vm401_vm0, %v784_v38  ;;  %v1653_v51 = vadd.f32 %v1621_v33, %v1553_v39  ;;  %v1017_v58 = vadd.f32 %v985_v44, %v917_v43  ;;  %v1185_v36 = vmul.f32 %v3438_v22, %v3318_v55  ;;  %v1253_v59 = vmul.f32 %v3442_v25, %v3320_v56  ;;  %v3526_v10 = vpop.f32.mrb[24].mxu0 }
 0x1b4   : > { %2731 = vmatmul.mubr.msk.f32.gmra.mrb[2].mxu1 %vm401_vm0, %v1788_v45  ;;  %v1685_v63 = vadd.f32 %v1384_v49, %v1116_v29  ;;  %v783_v0 = vmax.f32 %v751_v50, 0.0  ;;  %v1353_v37 = vmul.f32 %v3448_v30, %v3322_v57  ;;  %v1454_v1 = vmul.f32 %v3326_v60, %v3506_v46  ;;  %v3532_v40 = vpop.f32.mrb[25].mxu0 }
 0x1b5   : > { %v1117_v13 = vadd.f32 %v1085_v52, %v1017_v58  ;;  %v1285_v16 = vadd.f32 %v1253_v59, %v1185_v36  ;;  %v1522_v5 = vmul.f32 %v3328_v61, %v3512_v53  ;;  %v1622_v21 = vmul.f32 %v3330_v62, %v3514_v54 }
 0x1b6   : > { %v1717_v41 = vadd.f32 %v1685_v63, %v1653_v51  ;;  %864 = vst.msk [vmem:[#allocation2 + $0x168] sm:$0xff] %vm401_vm0, %v783_v0  ;;  %v718_v6 = vmul.f32 %v2712_v35, %v3274_v8  ;;  %v918_v18 = vmul.f32 %v3403_v27, %v3281_v11  ;;  %v986_v23 = vmul.f32 %v3405_v28, %v3285_v12  ;;  %v3552_v28 = vld [vmem:[#allocation2 + $0xa9] sm:$0xff] }
 0x1b7   : > { %v1385_v42 = vadd.f32 %v1353_v37, %v1285_v16  ;;  %v1554_v3 = vadd.f32 %v1522_v5, %v1454_v1  ;;  %v1086_v26 = vmul.f32 %v3419_v48, %v3298_v34  ;;  %v1186_v29 = vmul.f32 %v3477_v17, %v3318_v55  ;;  %v3554_v33 = vpop.f32.mrb[26].mxu0  ;;  %v3576_v37 = vld [vmem:[#allocation2 + $0xaf] sm:$0xff] }
 0x1b8   : > { %v1753_v7 = vmul.f32 %v3336_v14, %v1717_v41  ;;  %v754_v31 = vadd.f32 %v3279_v9, %v718_v6  ;;  %v1018_v20 = vadd.f32 %v986_v23, %v918_v18  ;;  %v1254_v27 = vmul.f32 %v3479_v19, %v3320_v56  ;;  %v3560_v39 = vpop.f32.mrb[27].mxu0 }
 0x1b9   : > { %v1654_v4 = vadd.f32 %v1622_v21, %v1554_v3  ;;  %v1686_v35 = vadd.f32 %v1385_v42, %v1117_v13  ;;  %v1354_v48 = vmul.f32 %v3485_v2, %v3322_v57  ;;  %v1455_v38 = vmul.f32 %v3326_v60, %v3540_v24  ;;  %v3584_v21 = vld [vmem:[#allocation2 + $0xb0] sm:$0xff] }
 0x1ba   : > { %v1789_v43 = vadd.f32 %v3338_v15, %v1753_v7  ;;  %v786_v44 = vmax.f32 %v754_v31, 0.0  ;;  %v1118_v45 = vadd.f32 %v1086_v26, %v1018_v20  ;;  %v1286_v49 = vadd.f32 %v1254_v27, %v1186_v29 }
 0x1bb   : > { %v1718_v50 = vadd.f32 %v1686_v35, %v1654_v4  ;;  %v1523_v52 = vmul.f32 %v3328_v61, %v3550_v32  ;;  %v1623_v51 = vmul.f32 %v3330_v62, %v3552_v28  ;;  %v717_v58 = vmul.f32 %v3274_v8, %v642_v47  ;;  %v3578_v1 = vpop.f32.mrb[28].mxu0 }
 0x1bc   : > { %2733 = vmatprep.mubr.msk.f32.mxu1 %vm401_vm0, %v1789_v43  ;;  %867 = vst.msk [vmem:[#allocation2 + $0x190] sm:$0xff] %vm401_vm0, %v786_v44  ;;  %v1386_v36 = vadd.f32 %v1354_v48, %v1286_v49  ;;  %v919_v59 = vmul.f32 %v3438_v22, %v3281_v11  ;;  %v987_v63 = vmul.f32 %v3442_v25, %v3285_v12  ;;  %v3586_v22 = vld [vmem:[#allocation2 + $0xb1] sm:$0xff]  ;;  %v3588_v25 = vpop.f32.mrb[29].mxu0  ;;  %v3611_v43 = vld [vmem:[#allocation2 + $0xc7] sm:$0xff] }
 0x1bd   : > { %v1087_v0 = vmul.f32 %v3448_v30, %v3298_v34  ;;  %v1754_v47 = vmul.f32 %v3336_v14, %v1718_v50  ;;  %v1555_v13 = vadd.f32 %v1523_v52, %v1455_v38  ;;  %v753_v16 = vadd.f32 %v3279_v9, %v717_v58  ;;  %v3623_v58 = vld [vmem:[#allocation2 + $0xc8] sm:$0xff] }
 0x1be   : > { %v1187_v5 = vmul.f32 %v3506_v46, %v3318_v55  ;;  %v1687_v41 = vadd.f32 %v1386_v36, %v1118_v45  ;;  %v1019_v30 = vadd.f32 %v987_v63, %v919_v59  ;;  %v1255_v6 = vmul.f32 %v3512_v53, %v3320_v56  ;;  %v3625_v36 = vld [vmem:[#allocation2 + $0xc9] sm:$0xff] }
 0x1bf   : > { %v1355_v18 = vmul.f32 %v3514_v54, %v3322_v57  ;;  %v1790_v23 = vadd.f32 %v3338_v15, %v1754_v47  ;;  %v1655_v42 = vadd.f32 %v1623_v51, %v1555_v13  ;;  %v785_v3 = vmax.f32 %v753_v16, 0.0  ;;  %v3601_v27 = vpop.f32.mrb[30].mxu0 }
 0x1c0   : > { %v1456_v26 = vmul.f32 %v3326_v60, %v3576_v37  ;;  %v1119_v29 = vadd.f32 %v1087_v0, %v1019_v30  ;;  %v1287_v7 = vadd.f32 %v1255_v6, %v1187_v5  ;;  %v1524_v31 = vmul.f32 %v3328_v61, %v3584_v21  ;;  %v3613_v44 = vpop.f32.mrb[31].mxu0 }
 0x1c1   : > { %v1624_v20 = vmul.f32 %v3330_v62, %v3586_v22  ;;  %2734 = vmatmul.mubr.msk.f32.gmra.mrb[4].mxu1 %vm401_vm0, %v1790_v23  ;;  %v1719_v4 = vadd.f32 %v1687_v41, %v1655_v42  ;;  %866 = vst.msk [vmem:[#allocation2 + $0x188] sm:$0xff] %vm401_vm0, %v785_v3  ;;  %v720_v35 = vmul.f32 %v3526_v10, %v3274_v8 }
 0x1c2   : > { %v920_v48 = vmul.f32 %v3477_v17, %v3281_v11  ;;  %v988_v38 = vmul.f32 %v3479_v19, %v3285_v12  ;;  %v1387_v45 = vadd.f32 %v1355_v18, %v1287_v7  ;;  %v1556_v49 = vadd.f32 %v1524_v31, %v1456_v26 }
 0x1c3   : > { %v1088_v50 = vmul.f32 %v3485_v2, %v3298_v34  ;;  %v1188_v52 = vmul.f32 %v3540_v24, %v3318_v55  ;;  %v1755_v10 = vmul.f32 %v3336_v14, %v1719_v4  ;;  %v756_v51 = vadd.f32 %v3279_v9, %v720_v35  ;;  %v3652_v4 = vld [vmem:[#allocation2 + $0xd0] sm:$0xff] }
 0x1c4   : > { %v1020_v17 = vadd.f32 %v988_v38, %v920_v48  ;;  %v1256_v19 = vmul.f32 %v3550_v32, %v3320_v56  ;;  %v1656_v59 = vadd.f32 %v1624_v20, %v1556_v49  ;;  %v1688_v63 = vadd.f32 %v1387_v45, %v1119_v29  ;;  %v3646_v29 = vld [vmem:[#allocation2 + $0xcf] sm:$0xff] }
 0x1c5   : > { %v1356_v2 = vmul.f32 %v3552_v28, %v3322_v57  ;;  %v1457_v0 = vmul.f32 %v3326_v60, %v3611_v43  ;;  %v1791_v47 = vadd.f32 %v3338_v15, %v1755_v10  ;;  %v788_v13 = vmax.f32 %v756_v51, 0.0  ;;  %v3654_v35 = vld [vmem:[#allocation2 + $0xd1] sm:$0xff] }
 0x1c6   : > { %v1120_v16 = vadd.f32 %v1088_v50, %v1020_v17  ;;  %v1288_v5 = vadd.f32 %v1256_v19, %v1188_v52  ;;  %v1720_v41 = vadd.f32 %v1688_v63, %v1656_v59  ;;  %v1525_v30 = vmul.f32 %v3328_v61, %v3623_v58 }
 0x1c7   : > { %v1625_v6 = vmul.f32 %v3330_v62, %v3625_v36  ;;  %v719_v18 = vmul.f32 %v3274_v8, %v3532_v40  ;;  %2736 = vmatprep.mubr.msk.f32.mxu1 %vm401_vm0, %v1791_v47  ;;  %869 = vst.msk [vmem:[#allocation2 + $0x1b0] sm:$0xff] %vm401_vm0, %v788_v13  ;;  %v921_v42 = vmul.f32 %v3506_v46, %v3281_v11 }
 0x1c8   : > { %v1388_v23 = vadd.f32 %v1356_v2, %v1288_v5  ;;  %v989_v3 = vmul.f32 %v3512_v53, %v3285_v12  ;;  %v1089_v26 = vmul.f32 %v3514_v54, %v3298_v34  ;;  %v1756_v7 = vmul.f32 %v3336_v14, %v1720_v41 }
 0x1c9   : > { %v1557_v31 = vadd.f32 %v1525_v30, %v1457_v0  ;;  %v755_v40 = vadd.f32 %v3279_v9, %v719_v18  ;;  %v1189_v20 = vmul.f32 %v3576_v37, %v3318_v55  ;;  %v1257_v53 = vmul.f32 %v3584_v21, %v3320_v56  ;;  %v3675_v0 = vld [vmem:[#allocation2 + $0xe7] sm:$0xff] }
 0x1ca   : > { %v1689_v46 = vadd.f32 %v1388_v23, %v1120_v16  ;;  %v1021_v48 = vadd.f32 %v989_v3, %v921_v42  ;;  %v1357_v54 = vmul.f32 %v3586_v22, %v3322_v57  ;;  %v1792_v38 = vadd.f32 %v3338_v15, %v1756_v7 }
 0x1cb   : > { %v1657_v45 = vadd.f32 %v1625_v6, %v1557_v31  ;;  %v787_v49 = vmax.f32 %v755_v40, 0.0  ;;  %v1458_v50 = vmul.f32 %v3326_v60, %v3646_v29  ;;  %v1289_v10 = vadd.f32 %v1257_v53, %v1189_v20  ;;  %v3685_v6 = vld [vmem:[#allocation2 + $0xe8] sm:$0xff] }
 0x1cc   : > { %v1121_v52 = vadd.f32 %v1089_v26, %v1021_v48  ;;  %v1526_v51 = vmul.f32 %v3328_v61, %v3652_v4  ;;  %v1626_v17 = vmul.f32 %v3330_v62, %v3654_v35  ;;  %2737 = vmatmul.mubr.msk.f32.gmra.mrb[6].mxu1 %vm401_vm0, %v1792_v38  ;;  %v722_v59 = vmul.f32 %v3554_v33, %v3274_v8 }
 0x1cd   : > { %v1721_v19 = vadd.f32 %v1689_v46, %v1657_v45  ;;  %868 = vst.msk [vmem:[#allocation2 + $0x1a8] sm:$0xff] %vm401_vm0, %v787_v49  ;;  %v922_v63 = vmul.f32 %v3540_v24, %v3281_v11  ;;  %v990_v2 = vmul.f32 %v3550_v32, %v3285_v12  ;;  %v1389_v47 = vadd.f32 %v1357_v54, %v1289_v10  ;;  %v3687_v32 = vld [vmem:[#allocation2 + $0xe9] sm:$0xff] }
 0x1ce   : > { %v1558_v13 = vadd.f32 %v1526_v51, %v1458_v50  ;;  %v1090_v16 = vmul.f32 %v3552_v28, %v3298_v34  ;;  %v1190_v5 = vmul.f32 %v3611_v43, %v3318_v55  ;;  %v758_v33 = vadd.f32 %v3279_v9, %v722_v59  ;;  %v3708_v49 = vld [vmem:[#allocation2 + $0xef] sm:$0xff] }
 0x1cf   : > { %v1757_v41 = vmul.f32 %v3336_v14, %v1721_v19  ;;  %v1022_v30 = vadd.f32 %v990_v2, %v922_v63  ;;  %v1258_v24 = vmul.f32 %v3623_v58, %v3320_v56  ;;  %v1690_v23 = vadd.f32 %v1389_v47, %v1121_v52  ;;  %v3714_v51 = vld [vmem:[#allocation2 + $0xf0] sm:$0xff] }
 0x1d0   : > { %v1658_v18 = vadd.f32 %v1626_v17, %v1558_v13  ;;  %v1358_v28 = vmul.f32 %v3625_v36, %v3322_v57  ;;  %v1459_v42 = vmul.f32 %v3326_v60, %v3675_v0  ;;  %v790_v26 = vmax.f32 %v758_v33, 0.0  ;;  %v3716_v17 = vld [vmem:[#allocation2 + $0xf1] sm:$0xff] }
 0x1d1   : > { %v1793_v3 = vadd.f32 %v3338_v15, %v1757_v41  ;;  %v1122_v7 = vadd.f32 %v1090_v16, %v1022_v30  ;;  %v1290_v31 = vadd.f32 %v1258_v24, %v1190_v5  ;;  %v1527_v20 = vmul.f32 %v3328_v61, %v3685_v6 }
 0x1d2   : > { %v1722_v40 = vadd.f32 %v1690_v23, %v1658_v18  ;;  %v1627_v46 = vmul.f32 %v3330_v62, %v3687_v32  ;;  %v721_v48 = vmul.f32 %v3274_v8, %v3560_v39  ;;  %871 = vst.msk [vmem:[#allocation2 + $0x1d0] sm:$0xff] %vm401_vm0, %v790_v26  ;;  %v923_v54 = vmul.f32 %v3576_v37, %v3281_v11  ;;  %v3737_v23 = vld [vmem:[#allocation2 + $0x107] sm:$0xff] }
 0x1d3   : > { %2739 = vmatprep.mubr.msk.f32.mxu1 %vm401_vm0, %v1793_v3  ;;  %v1390_v53 = vadd.f32 %v1358_v28, %v1290_v31  ;;  %v991_v38 = vmul.f32 %v3584_v21, %v3285_v12  ;;  %v1091_v45 = vmul.f32 %v3586_v22, %v3298_v34  ;;  %v1559_v52 = vadd.f32 %v1527_v20, %v1459_v42 }
 0x1d4   : > { %v1758_v50 = vmul.f32 %v3336_v14, %v1722_v40  ;;  %v757_v39 = vadd.f32 %v3279_v9, %v721_v48  ;;  %v1191_v10 = vmul.f32 %v3646_v29, %v3318_v55  ;;  %v1259_v21 = vmul.f32 %v3652_v4, %v3320_v56  ;;  %v3747_v40 = vld [vmem:[#allocation2 + $0x108] sm:$0xff] }
 0x1d5   : > { %v1691_v37 = vadd.f32 %v1390_v53, %v1122_v7  ;;  %v1023_v19 = vadd.f32 %v991_v38, %v923_v54  ;;  %v1359_v22 = vmul.f32 %v3654_v35, %v3322_v57  ;;  %v1659_v63 = vadd.f32 %v1627_v46, %v1559_v52 }
 0x1d6   : > { %v1794_v59 = vadd.f32 %v3338_v15, %v1758_v50  ;;  %v789_v2 = vmax.f32 %v757_v39, 0.0  ;;  %v1460_v47 = vmul.f32 %v3326_v60, %v3708_v49  ;;  %v1291_v16 = vadd.f32 %v1259_v21, %v1191_v10 }
 0x1d7   : > { %v1123_v13 = vadd.f32 %v1091_v45, %v1023_v19  ;;  %v1528_v5 = vmul.f32 %v3328_v61, %v3714_v51  ;;  %v1628_v41 = vmul.f32 %v3330_v62, %v3716_v17  ;;  %v1723_v33 = vadd.f32 %v1691_v37, %v1659_v63 }
 0x1d8   : > { %2740 = vmatmul.mubr.msk.f32.gmra.mrb[8].mxu1 %vm401_vm0, %v1794_v59  ;;  %870 = vst.msk [vmem:[#allocation2 + $0x1c8] sm:$0xff] %vm401_vm0, %v789_v2  ;;  %v724_v30 = vmul.f32 %v3578_v1, %v3274_v8  ;;  %v924_v24 = vmul.f32 %v3611_v43, %v3281_v11  ;;  %v992_v18 = vmul.f32 %v3623_v58, %v3285_v12  ;;  %v3749_v58 = vld [vmem:[#allocation2 + $0x109] sm:$0xff] }
 0x1d9   : > { %v1391_v28 = vadd.f32 %v1359_v22, %v1291_v16  ;;  %v1560_v42 = vadd.f32 %v1528_v5, %v1460_v47  ;;  %v1092_v3 = vmul.f32 %v3625_v36, %v3298_v34  ;;  %v1192_v26 = vmul.f32 %v3675_v0, %v3318_v55  ;;  %v3770_v59 = vld [vmem:[#allocation2 + $0x10f] sm:$0xff] }
 0x1da   : > { %v1759_v7 = vmul.f32 %v3336_v14, %v1723_v33  ;;  %v760_v1 = vadd.f32 %v3279_v9, %v724_v30  ;;  %v1024_v31 = vadd.f32 %v992_v18, %v924_v24  ;;  %v1260_v43 = vmul.f32 %v3685_v6, %v3320_v56  ;;  %v3778_v16 = vld [vmem:[#allocation2 + $0x111] sm:$0xff] }
 0x1db   : > { %v1660_v20 = vadd.f32 %v1628_v41, %v1560_v42  ;;  %v1692_v46 = vadd.f32 %v1391_v28, %v1123_v13  ;;  %v1360_v36 = vmul.f32 %v3687_v32, %v3322_v57  ;;  %v1461_v48 = vmul.f32 %v3326_v60, %v3737_v23  ;;  %v3776_v13 = vld [vmem:[#allocation2 + $0x110] sm:$0xff] }
 0x1dc   : > { %v1795_v53 = vadd.f32 %v3338_v15, %v1759_v7  ;;  %v792_v54 = vmax.f32 %v760_v1, 0.0  ;;  %v1124_v38 = vadd.f32 %v1092_v3, %v1024_v31  ;;  %v1292_v45 = vadd.f32 %v1260_v43, %v1192_v26  ;;  %v3799_v43 = vld [vmem:[#allocation2 + $0x127] sm:$0xff] }
 0x1dd   : > { %v1724_v50 = vadd.f32 %v1692_v46, %v1660_v20  ;;  %v1529_v52 = vmul.f32 %v3328_v61, %v3747_v40  ;;  %v1629_v39 = vmul.f32 %v3330_v62, %v3749_v58  ;;  %v723_v10 = vmul.f32 %v3274_v8, %v3588_v25 }
 0x1de   : > { %2742 = vmatprep.mubr.msk.f32.mxu1 %vm401_vm0, %v1795_v53  ;;  %873 = vst.msk [vmem:[#allocation2 + $0x1f0] sm:$0xff] %vm401_vm0, %v792_v54  ;;  %v1392_v37 = vadd.f32 %v1360_v36, %v1292_v45  ;;  %v925_v19 = vmul.f32 %v3646_v29, %v3281_v11  ;;  %v993_v21 = vmul.f32 %v3652_v4, %v3285_v12  ;;  %v3809_v54 = vld [vmem:[#allocation2 + $0x128] sm:$0xff] }
 0x1df   : > { %v1093_v22 = vmul.f32 %v3654_v35, %v3298_v34  ;;  %v1760_v63 = vmul.f32 %v3336_v14, %v1724_v50  ;;  %v1561_v2 = vadd.f32 %v1529_v52, %v1461_v48  ;;  %v759_v25 = vadd.f32 %v3279_v9, %v723_v10 }
 0x1e0   : > { %v1193_v47 = vmul.f32 %v3708_v49, %v3318_v55  ;;  %v1693_v29 = vadd.f32 %v1392_v37, %v1124_v38  ;;  %v1025_v5 = vadd.f32 %v993_v21, %v925_v19  ;;  %v1261_v4 = vmul.f32 %v3714_v51, %v3320_v56 }
 0x1e1   : > { %v1361_v35 = vmul.f32 %v3716_v17, %v3322_v57  ;;  %v1796_v41 = vadd.f32 %v3338_v15, %v1760_v63  ;;  %v1661_v33 = vadd.f32 %v1629_v39, %v1561_v2  ;;  %v791_v30 = vmax.f32 %v759_v25, 0.0 }
 0x1e2   : > { %v1462_v24 = vmul.f32 %v3326_v60, %v3770_v59  ;;  %v1125_v18 = vadd.f32 %v1093_v22, %v1025_v5  ;;  %v1293_v28 = vadd.f32 %v1261_v4, %v1193_v47  ;;  %v1530_v42 = vmul.f32 %v3328_v61, %v3776_v13  ;;  %v2827_v22 = vld [vmem:[%s4547_s2] ss:$0 sm:$0xff]  ;;  %v3834_v5 = vld [vmem:[#allocation2 + $0x12f] sm:$0xff] }
 0x1e3   : > { %v1630_v3 = vmul.f32 %v3330_v62, %v3778_v16  ;;  %2743 = vmatmul.mubr.msk.f32.gmra.mrb[10].mxu1 %vm401_vm0, %v1796_v41  ;;  %v1725_v26 = vadd.f32 %v1693_v29, %v1661_v33  ;;  %872 = vst.msk [vmem:[#allocation2 + $0x1e8] sm:$0xff] %vm401_vm0, %v791_v30  ;;  %v726_v7 = vmul.f32 %v3601_v27, %v3274_v8  ;;  %v3844_v30 = vld [vmem:[#allocation2 + $0x131] sm:$0xff] }
 0x1e4   : > { %v926_v1 = vmul.f32 %v3675_v0, %v3281_v11  ;;  %v994_v31 = vmul.f32 %v3685_v6, %v3285_v12  ;;  %v1393_v20 = vadd.f32 %v1361_v35, %v1293_v28  ;;  %v1562_v46 = vadd.f32 %v1530_v42, %v1462_v24  ;;  %v3811_v6 = vld [vmem:[#allocation2 + $0x129] sm:$0xff] }
 0x1e5   : > { %v1094_v36 = vmul.f32 %v3687_v32, %v3298_v34  ;;  %v1194_v48 = vmul.f32 %v3737_v23, %v3318_v55  ;;  %v1761_v53 = vmul.f32 %v3336_v14, %v1725_v26  ;;  %v762_v8 = vadd.f32 %v3279_v9, %v726_v7 }
 0x1e6   : > { %v1026_v27 = vadd.f32 %v994_v31, %v926_v1  ;;  %v1262_v0 = vmul.f32 %v3747_v40, %v3320_v56  ;;  %v1662_v38 = vadd.f32 %v1630_v3, %v1562_v46  ;;  %v1694_v45 = vadd.f32 %v1393_v20, %v1125_v18  ;;  %v3857_v46 = vld [vmem:[#allocation2 + $0x147] sm:$0xff] }
 0x1e7   : > { %v1362_v32 = vmul.f32 %v3749_v58, %v3322_v57  ;;  %v1463_v50 = vmul.f32 %v3326_v60, %v3799_v43  ;;  %v1797_v52 = vadd.f32 %v3338_v15, %v1761_v53  ;;  %v794_v39 = vmax.f32 %v762_v8, 0.0 }
 0x1e8   : > { %v1126_v9 = vadd.f32 %v1094_v36, %v1026_v27  ;;  %v1294_v10 = vadd.f32 %v1262_v0, %v1194_v48  ;;  %v1726_v37 = vadd.f32 %v1694_v45, %v1662_v38  ;;  %v1531_v19 = vmul.f32 %v3328_v61, %v3809_v54  ;;  %v3867_v27 = vld [vmem:[#allocation2 + $0x148] sm:$0xff] }
 0x1e9   : > { %v1631_v21 = vmul.f32 %v3330_v62, %v3811_v6  ;;  %v725_v63 = vmul.f32 %v2827_v22, %v3613_v44  ;;  %2745 = vmatprep.mubr.msk.f32.mxu1 %vm401_vm0, %v1797_v52  ;;  %875 = vst.msk [vmem:[#allocation2 + $0x210] sm:$0xff] %vm401_vm0, %v794_v39  ;;  %v927_v25 = vmul.f32 %v3708_v49, %v3281_v11  ;;  %v2828_v44 = vld [vmem:[%s4547_s2 + $0x1] ss:$0 sm:$0xff]  ;;  %v3842_v49 = vld [vmem:[#allocation2 + $0x130] sm:$0xff] }
 0x1ea   : > { %v1394_v2 = vadd.f32 %v1362_v32, %v1294_v10  ;;  %v995_v47 = vmul.f32 %v3714_v51, %v3285_v12  ;;  %v1095_v29 = vmul.f32 %v3716_v17, %v3298_v34  ;;  %v1762_v4 = vmul.f32 %v3336_v14, %v1726_v37 }
 0x1eb   : > { %v1563_v35 = vadd.f32 %v1531_v19, %v1463_v50  ;;  %v761_v41 = vadd.f32 %v2828_v44, %v725_v63  ;;  %v1195_v33 = vmul.f32 %v3770_v59, %v3318_v55  ;;  %v1263_v17 = vmul.f32 %v3776_v13, %v3320_v56  ;;  %v3873_v50 = vld [vmem:[#allocation2 + $0x149] sm:$0xff]  ;;  %v3893_v44 = vld [vmem:[#allocation2 + $0x151] sm:$0xff] }
 0x1ec   : > { %v1695_v51 = vadd.f32 %v1394_v2, %v1126_v9  ;;  %v1027_v24 = vadd.f32 %v995_v47, %v927_v25  ;;  %v1363_v18 = vmul.f32 %v3778_v16, %v3322_v57  ;;  %v1798_v28 = vadd.f32 %v3338_v15, %v1762_v4  ;;  %v3889_v4 = vld [vmem:[#allocation2 + $0x14f] sm:$0xff] }
 0x1ed   : > { %v1663_v42 = vadd.f32 %v1631_v21, %v1563_v35  ;;  %v793_v3 = vmax.f32 %v761_v41, 0.0  ;;  %v1464_v26 = vmul.f32 %v3326_v60, %v3834_v5  ;;  %v1295_v1 = vadd.f32 %v1263_v17, %v1195_v33  ;;  %v3891_v35 = vld [vmem:[#allocation2 + $0x150] sm:$0xff] }
 0x1ee   : > { %v1127_v7 = vadd.f32 %v1095_v29, %v1027_v24  ;;  %v1532_v31 = vmul.f32 %v3328_v61, %v3842_v49  ;;  %v1632_v20 = vmul.f32 %v3330_v62, %v3844_v30  ;;  %2746 = vmatmul.mubr.msk.f32.gmra.mrb[12].mxu1 %vm401_vm0, %v1798_v28  ;;  %v928_v48 = vmul.f32 %v3737_v23, %v3281_v11 }
 0x1ef   : > { %v1727_v36 = vadd.f32 %v1695_v51, %v1663_v42  ;;  %874 = vst.msk [vmem:[#allocation2 + $0x208] sm:$0xff] %vm401_vm0, %v793_v3  ;;  %v996_v53 = vmul.f32 %v3747_v40, %v3285_v12  ;;  %v1096_v8 = vmul.f32 %v3749_v58, %v3298_v34  ;;  %v1395_v0 = vadd.f32 %v1363_v18, %v1295_v1 }
 0x1f0   : > { %v1564_v38 = vadd.f32 %v1532_v31, %v1464_v26  ;;  %v1196_v45 = vmul.f32 %v3799_v43, %v3318_v55  ;;  %v1264_v32 = vmul.f32 %v3809_v54, %v3320_v56  ;;  %v1364_v40 = vmul.f32 %v3811_v6, %v3322_v57 }
 0x1f1   : > { %v1763_v23 = vmul.f32 %v3336_v14, %v1727_v36  ;;  %v1028_v52 = vadd.f32 %v996_v53, %v928_v48  ;;  %v1465_v58 = vmul.f32 %v3326_v60, %v3857_v46  ;;  %v1696_v9 = vadd.f32 %v1395_v0, %v1127_v7  ;;  %v3920_v0 = vld [vmem:[#allocation2 + $0x168] sm:$0xff] }
 0x1f2   : > { %v1664_v39 = vadd.f32 %v1632_v20, %v1564_v38  ;;  %v1296_v10 = vadd.f32 %v1264_v32, %v1196_v45  ;;  %v1533_v37 = vmul.f32 %v3328_v61, %v3867_v27  ;;  %v1633_v22 = vmul.f32 %v3330_v62, %v3873_v50  ;;  %v3914_v20 = vld [vmem:[#allocation2 + $0x167] sm:$0xff] }
 0x1f3   : > { %v1799_v19 = vadd.f32 %v3338_v15, %v1763_v23  ;;  %v1128_v21 = vadd.f32 %v1096_v8, %v1028_v52  ;;  %v929_v63 = vmul.f32 %v3770_v59, %v3281_v11  ;;  %v997_v29 = vmul.f32 %v3776_v13, %v3285_v12  ;;  %v3922_v38 = vld [vmem:[#allocation2 + $0x169] sm:$0xff] }
 0x1f4   : > { %v1728_v2 = vadd.f32 %v1696_v9, %v1664_v39  ;;  %v1396_v25 = vadd.f32 %v1364_v40, %v1296_v10  ;;  %v1565_v47 = vadd.f32 %v1533_v37, %v1465_v58  ;;  %v1097_v41 = vmul.f32 %v3778_v16, %v3298_v34 }
 0x1f5   : > { %2748 = vmatprep.mubr.msk.f32.mxu1 %vm401_vm0, %v1799_v19  ;;  %v1197_v59 = vmul.f32 %v3834_v5, %v3318_v55  ;;  %v1265_v33 = vmul.f32 %v3842_v49, %v3320_v56  ;;  %v1365_v13 = vmul.f32 %v3844_v30, %v3322_v57  ;;  %v1029_v18 = vadd.f32 %v997_v29, %v929_v63  ;;  %v3943_v63 = vld [vmem:[#allocation2 + $0x16f] sm:$0xff] }
 0x1f6   : > { %v1764_v51 = vmul.f32 %v3336_v14, %v1728_v2  ;;  %v1665_v24 = vadd.f32 %v1633_v22, %v1565_v47  ;;  %v1697_v17 = vadd.f32 %v1396_v25, %v1128_v21  ;;  %v1466_v42 = vmul.f32 %v3326_v60, %v3889_v4  ;;  %v3945_v2 = vld [vmem:[#allocation2 + $0x170] sm:$0xff] }
 0x1f7   : > { %v1297_v28 = vadd.f32 %v1265_v33, %v1197_v59  ;;  %v1534_v16 = vmul.f32 %v3328_v61, %v3891_v35  ;;  %v1634_v3 = vmul.f32 %v3330_v62, %v3893_v44  ;;  %v1129_v1 = vadd.f32 %v1097_v41, %v1029_v18  ;;  %v3952_v59 = vld [vmem:[#allocation2 + $0x171] sm:$0xff] }
 0x1f8   : > { %v1800_v26 = vadd.f32 %v3338_v15, %v1764_v51  ;;  %v1729_v7 = vadd.f32 %v1697_v17, %v1665_v24  ;;  %v930_v31 = vmul.f32 %v3799_v43, %v3281_v11  ;;  %v998_v53 = vmul.f32 %v3809_v54, %v3285_v12 }
 0x1f9   : > { %v1397_v36 = vadd.f32 %v1365_v13, %v1297_v28  ;;  %v1566_v48 = vadd.f32 %v1534_v16, %v1466_v42  ;;  %v1098_v8 = vmul.f32 %v3811_v6, %v3298_v34  ;;  %v1198_v43 = vmul.f32 %v3857_v46, %v3318_v55 }
 0x1fa   : > { %2749 = vmatmul.mubr.msk.f32.gmra.mrb[14].mxu1 %vm401_vm0, %v1800_v26  ;;  %v1765_v45 = vmul.f32 %v3336_v14, %v1729_v7  ;;  %v1266_v32 = vmul.f32 %v3867_v27, %v3320_v56  ;;  %v1366_v54 = vmul.f32 %v3873_v50, %v3322_v57  ;;  %v1030_v6 = vadd.f32 %v998_v53, %v930_v31  ;;  %v3970_v31 = vld [vmem:[#allocation2 + $0x187] sm:$0xff] }
 0x1fb   : > { %v1666_v23 = vadd.f32 %v1634_v3, %v1566_v48  ;;  %v1698_v52 = vadd.f32 %v1397_v36, %v1129_v1  ;;  %v1467_v40 = vmul.f32 %v3326_v60, %v3914_v20  ;;  %v1535_v9 = vmul.f32 %v3328_v61, %v3920_v0  ;;  %v3972_v36 = vld [vmem:[#allocation2 + $0x188] sm:$0xff] }
 0x1fc   : > { %v1801_v58 = vadd.f32 %v3338_v15, %v1765_v45  ;;  %v1298_v39 = vadd.f32 %v1266_v32, %v1198_v43  ;;  %v1635_v10 = vmul.f32 %v3330_v62, %v3922_v38  ;;  %v1130_v19 = vadd.f32 %v1098_v8, %v1030_v6 }
 0x1fd   : > { %v1730_v37 = vadd.f32 %v1698_v52, %v1666_v23  ;;  %v931_v21 = vmul.f32 %v3834_v5, %v3281_v11  ;;  %v999_v22 = vmul.f32 %v3842_v49, %v3285_v12  ;;  %v1567_v47 = vadd.f32 %v1535_v9, %v1467_v40 }
 0x1fe   : > { %2751 = vmatprep.mubr.msk.f32.mxu1 %vm401_vm0, %v1801_v58  ;;  %v1398_v25 = vadd.f32 %v1366_v54, %v1298_v39  ;;  %v1099_v29 = vmul.f32 %v3844_v30, %v3298_v34  ;;  %v1199_v41 = vmul.f32 %v3889_v4, %v3318_v55  ;;  %v1267_v49 = vmul.f32 %v3891_v35, %v3320_v56 }
 0x1ff   : > { %v1766_v5 = vmul.f32 %v3336_v14, %v1730_v37  ;;  %v1031_v33 = vadd.f32 %v999_v22, %v931_v21  ;;  %v1367_v13 = vmul.f32 %v3893_v44, %v3322_v57  ;;  %v1667_v51 = vadd.f32 %v1635_v10, %v1567_v47  ;;  %v3997_v22 = vld [vmem:[#allocation2 + $0x18f] sm:$0xff] }
 0x200   : > { %v1699_v24 = vadd.f32 %v1398_v25, %v1130_v19  ;;  %v1468_v17 = vmul.f32 %v3326_v60, %v3943_v63  ;;  %v1536_v30 = vmul.f32 %v3328_v61, %v3945_v2  ;;  %v1299_v42 = vadd.f32 %v1267_v49, %v1199_v41  ;;  %v3999_v25 = vld [vmem:[#allocation2 + $0x190] sm:$0xff] }
 0x201   : > { %v1802_v18 = vadd.f32 %v3338_v15, %v1766_v5  ;;  %v1131_v28 = vadd.f32 %v1099_v29, %v1031_v33  ;;  %v1636_v16 = vmul.f32 %v3330_v62, %v3952_v59  ;;  %v932_v7 = vmul.f32 %v3857_v46, %v3281_v11  ;;  %v3981_v46 = vld [vmem:[#allocation2 + $0x189] sm:$0xff]  ;;  %v4001_v47 = vld [vmem:[#allocation2 + $0x191] sm:$0xff] }
 0x202   : > { %v1731_v3 = vadd.f32 %v1699_v24, %v1667_v51  ;;  %v1568_v26 = vadd.f32 %v1536_v30, %v1468_v17  ;;  %v1000_v1 = vmul.f32 %v3867_v27, %v3285_v12  ;;  %v1399_v48 = vadd.f32 %v1367_v13, %v1299_v42 }
 0x203   : > { %2752 = vmatmul.mubr.msk.f32.gmra.mrb[16].mxu1 %vm401_vm0, %v1802_v18  ;;  %v1100_v53 = vmul.f32 %v3873_v50, %v3298_v34  ;;  %v1200_v8 = vmul.f32 %v3914_v20, %v3318_v55  ;;  %v1268_v45 = vmul.f32 %v3920_v0, %v3320_v56  ;;  %v1368_v54 = vmul.f32 %v3922_v38, %v3322_v57 }
 0x204   : > { %v1767_v27 = vmul.f32 %v3336_v14, %v1731_v3  ;;  %v1668_v43 = vadd.f32 %v1636_v16, %v1568_v26  ;;  %v1032_v32 = vadd.f32 %v1000_v1, %v932_v7  ;;  %v1700_v23 = vadd.f32 %v1399_v48, %v1131_v28  ;;  %v4022_v16 = vld [vmem:[#allocation2 + $0x1a7] sm:$0xff] }
 0x205   : > { %v1300_v52 = vadd.f32 %v1268_v45, %v1200_v8  ;;  %v1469_v50 = vmul.f32 %v3326_v60, %v3970_v31  ;;  %v1537_v6 = vmul.f32 %v3328_v61, %v3972_v36  ;;  %v1637_v39 = vmul.f32 %v3330_v62, %v3981_v46  ;;  %v4028_v48 = vld [vmem:[#allocation2 + $0x1a8] sm:$0xff] }
 0x206   : > { %v1803_v40 = vadd.f32 %v3338_v15, %v1767_v27  ;;  %v1132_v58 = vadd.f32 %v1100_v53, %v1032_v32  ;;  %v933_v9 = vmul.f32 %v3889_v4, %v3281_v11  ;;  %v1732_v10 = vadd.f32 %v1700_v23, %v1668_v43  ;;  %v4030_v53 = vld [vmem:[#allocation2 + $0x1a9] sm:$0xff] }
 0x207   : > { %v1400_v37 = vadd.f32 %v1368_v54, %v1300_v52  ;;  %v1569_v19 = vadd.f32 %v1537_v6, %v1469_v50  ;;  %v1001_v21 = vmul.f32 %v3891_v35, %v3285_v12  ;;  %v1101_v29 = vmul.f32 %v3893_v44, %v3298_v34 }
 0x208   : > { %2754 = vmatprep.mubr.msk.f32.mxu1 %vm401_vm0, %v1803_v40  ;;  %v1201_v4 = vmul.f32 %v3943_v63, %v3318_v55  ;;  %v1269_v41 = vmul.f32 %v3945_v2, %v3320_v56  ;;  %v1369_v35 = vmul.f32 %v3952_v59, %v3322_v57  ;;  %v1768_v5 = vmul.f32 %v3336_v14, %v1732_v10  ;;  %v4053_v10 = vld [vmem:[#allocation2 + $0x1b0] sm:$0xff] }
 0x209   : > { %v1669_v33 = vadd.f32 %v1637_v39, %v1569_v19  ;;  %v1701_v49 = vadd.f32 %v1400_v37, %v1132_v58  ;;  %v1033_v13 = vadd.f32 %v1001_v21, %v933_v9  ;;  %v1470_v24 = vmul.f32 %v3326_v60, %v3997_v22  ;;  %v4051_v9 = vld [vmem:[#allocation2 + $0x1af] sm:$0xff] }
 0x20a   : > { %v1301_v51 = vadd.f32 %v1269_v41, %v1201_v4  ;;  %v1538_v44 = vmul.f32 %v3328_v61, %v3999_v25  ;;  %v1638_v17 = vmul.f32 %v3330_v62, %v4001_v47  ;;  %v1804_v30 = vadd.f32 %v3338_v15, %v1768_v5  ;;  %v4060_v4 = vld [vmem:[#allocation2 + $0x1b1] sm:$0xff] }
 0x20b   : > { %v1733_v18 = vadd.f32 %v1701_v49, %v1669_v33  ;;  %v1133_v28 = vadd.f32 %v1101_v29, %v1033_v13  ;;  %v934_v42 = vmul.f32 %v3914_v20, %v3281_v11  ;;  %v1002_v7 = vmul.f32 %v3920_v0, %v3285_v12 }
 0x20c   : > { %v1401_v3 = vadd.f32 %v1369_v35, %v1301_v51  ;;  %v1570_v26 = vadd.f32 %v1538_v44, %v1470_v24  ;;  %v1102_v1 = vmul.f32 %v3922_v38, %v3298_v34  ;;  %2755 = vmatmul.mubr.msk.f32.gmra.mrb[18].mxu1 %vm401_vm0, %v1804_v30  ;;  %v1202_v20 = vmul.f32 %v3970_v31, %v3318_v55 }
 0x20d   : > { %v1769_v8 = vmul.f32 %v3336_v14, %v1733_v18  ;;  %v1270_v45 = vmul.f32 %v3972_v36, %v3320_v56  ;;  %v1370_v0 = vmul.f32 %v3981_v46, %v3322_v57  ;;  %v1034_v38 = vadd.f32 %v1002_v7, %v934_v42  ;;  %v4078_v42 = vld [vmem:[#allocation2 + $0x1c7] sm:$0xff] }
 0x20e   : > { %v1670_v27 = vadd.f32 %v1638_v17, %v1570_v26  ;;  %v1702_v43 = vadd.f32 %v1401_v3, %v1133_v28  ;;  %v1471_v32 = vmul.f32 %v3326_v60, %v4022_v16  ;;  %v1539_v52 = vmul.f32 %v3328_v61, %v4028_v48  ;;  %v4080_v3 = vld [vmem:[#allocation2 + $0x1c8] sm:$0xff] }
 0x20f   : > { %v1805_v54 = vadd.f32 %v3338_v15, %v1769_v8  ;;  %v1302_v23 = vadd.f32 %v1270_v45, %v1202_v20  ;;  %v1639_v50 = vmul.f32 %v3330_v62, %v4030_v53  ;;  %v1134_v40 = vadd.f32 %v1102_v1, %v1034_v38 }
 0x210   : > { %v1734_v6 = vadd.f32 %v1702_v43, %v1670_v27  ;;  %v935_v58 = vmul.f32 %v3943_v63, %v3281_v11  ;;  %v1003_v39 = vmul.f32 %v3945_v2, %v3285_v12  ;;  %v1571_v19 = vadd.f32 %v1539_v52, %v1471_v32 }
 0x211   : > { %2757 = vmatprep.mubr.msk.f32.mxu1 %vm401_vm0, %v1805_v54  ;;  %v1402_v37 = vadd.f32 %v1370_v0, %v1302_v23  ;;  %v1103_v21 = vmul.f32 %v3952_v59, %v3298_v34  ;;  %v1203_v29 = vmul.f32 %v3997_v22, %v3318_v55  ;;  %v1271_v2 = vmul.f32 %v3999_v25, %v3320_v56 }
 0x212   : > { %v1770_v63 = vmul.f32 %v3336_v14, %v1734_v6  ;;  %v1035_v41 = vadd.f32 %v1003_v39, %v935_v58  ;;  %v1371_v35 = vmul.f32 %v4001_v47, %v3322_v57  ;;  %v1671_v5 = vadd.f32 %v1639_v50, %v1571_v19  ;;  %v4105_v39 = vld [vmem:[#allocation2 + $0x1cf] sm:$0xff] }
 0x213   : > { %v1703_v33 = vadd.f32 %v1402_v37, %v1134_v40  ;;  %v1472_v49 = vmul.f32 %v3326_v60, %v4051_v9  ;;  %v1540_v59 = vmul.f32 %v3328_v61, %v4053_v10  ;;  %v1303_v24 = vadd.f32 %v1271_v2, %v1203_v29  ;;  %v4107_v37 = vld [vmem:[#allocation2 + $0x1d0] sm:$0xff] }
 0x214   : > { %v1806_v13 = vadd.f32 %v3338_v15, %v1770_v63  ;;  %v1135_v51 = vadd.f32 %v1103_v21, %v1035_v41  ;;  %v1640_v44 = vmul.f32 %v3330_v62, %v4060_v4  ;;  %v936_v18 = vmul.f32 %v3970_v31, %v3281_v11  ;;  %v4089_v31 = vld [vmem:[#allocation2 + $0x1c9] sm:$0xff]  ;;  %v4109_v19 = vld [vmem:[#allocation2 + $0x1d1] sm:$0xff] }
 0x215   : > { %v1735_v17 = vadd.f32 %v1703_v33, %v1671_v5  ;;  %v1572_v30 = vadd.f32 %v1540_v59, %v1472_v49  ;;  %v1004_v28 = vmul.f32 %v3972_v36, %v3285_v12  ;;  %v1403_v26 = vadd.f32 %v1371_v35, %v1303_v24 }
 0x216   : > { %2758 = vmatmul.mubr.msk.f32.gmra.mrb[20].mxu1 %vm401_vm0, %v1806_v13  ;;  %v1104_v7 = vmul.f32 %v3981_v46, %v3298_v34  ;;  %v1204_v1 = vmul.f32 %v4022_v16, %v3318_v55  ;;  %v1272_v8 = vmul.f32 %v4028_v48, %v3320_v56  ;;  %v1372_v0 = vmul.f32 %v4030_v53, %v3322_v57 }
 0x217   : > { %v1771_v36 = vmul.f32 %v3336_v14, %v1735_v17  ;;  %v1672_v20 = vadd.f32 %v1640_v44, %v1572_v30  ;;  %v1036_v45 = vadd.f32 %v1004_v28, %v936_v18  ;;  %v1704_v27 = vadd.f32 %v1403_v26, %v1135_v51  ;;  %v4130_v44 = vld [vmem:[#allocation2 + $0x1e7] sm:$0xff] }
 0x218   : > { %v1304_v43 = vadd.f32 %v1272_v8, %v1204_v1  ;;  %v1473_v46 = vmul.f32 %v3326_v60, %v4078_v42  ;;  %v1541_v38 = vmul.f32 %v3328_v61, %v4080_v3  ;;  %v1641_v23 = vmul.f32 %v3330_v62, %v4089_v31  ;;  %v4136_v26 = vld [vmem:[#allocation2 + $0x1e8] sm:$0xff] }
 0x219   : > { %v1807_v32 = vadd.f32 %v3338_v15, %v1771_v36  ;;  %v1136_v54 = vadd.f32 %v1104_v7, %v1036_v45  ;;  %v937_v52 = vmul.f32 %v3997_v22, %v3281_v11  ;;  %v1736_v50 = vadd.f32 %v1704_v27, %v1672_v20  ;;  %v4138_v7 = vld [vmem:[#allocation2 + $0x1e9] sm:$0xff] }
 0x21a   : > { %v1404_v6 = vadd.f32 %v1372_v0, %v1304_v43  ;;  %v1573_v40 = vadd.f32 %v1541_v38, %v1473_v46  ;;  %v1005_v58 = vmul.f32 %v3999_v25, %v3285_v12  ;;  %v1105_v21 = vmul.f32 %v4001_v47, %v3298_v34 }
 0x21b   : > { %2760 = vmatprep.mubr.msk.f32.mxu1 %vm401_vm0, %v1807_v32  ;;  %v1205_v22 = vmul.f32 %v4051_v9, %v3318_v55  ;;  %v1273_v29 = vmul.f32 %v4053_v10, %v3320_v56  ;;  %v1373_v25 = vmul.f32 %v4060_v4, %v3322_v57  ;;  %v1772_v63 = vmul.f32 %v3336_v14, %v1736_v50  ;;  %v4161_v50 = vld [vmem:[#allocation2 + $0x1f0] sm:$0xff] }
 0x21c   : > { %v1673_v41 = vadd.f32 %v1641_v23, %v1573_v40  ;;  %v1705_v2 = vadd.f32 %v1404_v6, %v1136_v54  ;;  %v1037_v35 = vadd.f32 %v1005_v58, %v937_v52  ;;  %v1474_v33 = vmul.f32 %v3326_v60, %v4105_v39  ;;  %v4159_v52 = vld [vmem:[#allocation2 + $0x1ef] sm:$0xff] }
 0x21d   : > { %v1305_v5 = vadd.f32 %v1273_v29, %v1205_v22  ;;  %v1542_v47 = vmul.f32 %v3328_v61, %v4107_v37  ;;  %v1642_v49 = vmul.f32 %v3330_v62, %v4109_v19  ;;  %v1808_v59 = vadd.f32 %v3338_v15, %v1772_v63  ;;  %v4168_v22 = vld [vmem:[#allocation2 + $0x1f1] sm:$0xff] }
 0x21e   : > { %v1737_v13 = vadd.f32 %v1705_v2, %v1673_v41  ;;  %v1137_v51 = vadd.f32 %v1105_v21, %v1037_v35  ;;  %v938_v24 = vmul.f32 %v4022_v16, %v3281_v11  ;;  %v1006_v18 = vmul.f32 %v4028_v48, %v3285_v12 }
 0x21f   : > { %v1405_v17 = vadd.f32 %v1373_v25, %v1305_v5  ;;  %v1574_v30 = vadd.f32 %v1542_v47, %v1474_v33  ;;  %v1106_v28 = vmul.f32 %v4030_v53, %v3298_v34  ;;  %2761 = vmatmul.mubr.msk.f32.gmra.mrb[22].mxu1 %vm401_vm0, %v1808_v59  ;;  %v1206_v16 = vmul.f32 %v4078_v42, %v3318_v55 }
 0x220   : > { %v1773_v1 = vmul.f32 %v3336_v14, %v1737_v13  ;;  %v1274_v8 = vmul.f32 %v4080_v3, %v3320_v56  ;;  %v1374_v48 = vmul.f32 %v4089_v31, %v3322_v57  ;;  %v1038_v53 = vadd.f32 %v1006_v18, %v938_v24  ;;  %v1441_v24 = vld [vmem:[#allocation2 + $0x207] sm:$0xff] }
 0x221   : > { %v1674_v36 = vadd.f32 %v1642_v49, %v1574_v30  ;;  %v1706_v20 = vadd.f32 %v1405_v17, %v1137_v51  ;;  %v1475_v45 = vmul.f32 %v3326_v60, %v4130_v44  ;;  %v1543_v43 = vmul.f32 %v3328_v61, %v4136_v26  ;;  %v1509_v17 = vld [vmem:[#allocation2 + $0x208] sm:$0xff] }
 0x222   : > { %v1809_v0 = vadd.f32 %v3338_v15, %v1773_v1  ;;  %v1306_v27 = vadd.f32 %v1274_v8, %v1206_v16  ;;  %v1643_v46 = vmul.f32 %v3330_v62, %v4138_v7  ;;  %v1138_v32 = vadd.f32 %v1106_v28, %v1038_v53  ;;  %v1609_v16 = vld [vmem:[#allocation2 + $0x209] sm:$0xff] }
 0x223   : > { %v1738_v38 = vadd.f32 %v1706_v20, %v1674_v36  ;;  %v939_v54 = vmul.f32 %v4051_v9, %v3281_v11  ;;  %v1007_v23 = vmul.f32 %v4053_v10, %v3285_v12  ;;  %v1575_v40 = vadd.f32 %v1543_v43, %v1475_v45 }
 0x224   : > { %2763 = vmatprep.mubr.msk.f32.mxu1 %vm401_vm0, %v1809_v0  ;;  %v1406_v6 = vadd.f32 %v1374_v48, %v1306_v27  ;;  %v1107_v58 = vmul.f32 %v4060_v4, %v3298_v34  ;;  %v1207_v21 = vmul.f32 %v4105_v39, %v3318_v55  ;;  %v1275_v10 = vmul.f32 %v4107_v37, %v3320_v56 }
 0x225   : > { %v1774_v9 = vmul.f32 %v3336_v14, %v1738_v38  ;;  %v1039_v29 = vadd.f32 %v1007_v23, %v939_v54  ;;  %v1375_v25 = vmul.f32 %v4109_v19, %v3322_v57  ;;  %v1675_v63 = vadd.f32 %v1643_v46, %v1575_v40  ;;  %v1442_v23 = vld [vmem:[#allocation2 + $0x20f] sm:$0xff] }
 0x226   : > { %v1707_v41 = vadd.f32 %v1406_v6, %v1138_v32  ;;  %v1476_v2 = vmul.f32 %v3326_v60, %v4159_v52  ;;  %v1544_v4 = vmul.f32 %v3328_v61, %v4161_v50  ;;  %v1307_v33 = vadd.f32 %v1275_v10, %v1207_v21  ;;  %v1510_v6 = vld [vmem:[#allocation2 + $0x210] sm:$0xff] }
 0x227   : > { %v1810_v35 = vadd.f32 %v3338_v15, %v1774_v9  ;;  %v1139_v5 = vadd.f32 %v1107_v58, %v1039_v29  ;;  %v1644_v47 = vmul.f32 %v3330_v62, %v4168_v22  ;;  %v940_v13 = vmul.f32 %v4078_v42, %v3281_v11  ;;  %v1610_v40 = vld [vmem:[#allocation2 + $0x211] sm:$0xff] }
 0x228   : > { %v1739_v49 = vadd.f32 %v1707_v41, %v1675_v63  ;;  %v1576_v59 = vadd.f32 %v1544_v4, %v1476_v2  ;;  %v1008_v51 = vmul.f32 %v4080_v3, %v3285_v12  ;;  %v1407_v30 = vadd.f32 %v1375_v25, %v1307_v33 }
 0x229   : > { %2764 = vmatmul.mubr.msk.f32.gmra.mrb[24].mxu1 %vm401_vm0, %v1810_v35  ;;  %v1108_v18 = vmul.f32 %v4089_v31, %v3298_v34  ;;  %v1208_v28 = vmul.f32 %v4130_v44, %v3318_v55  ;;  %v1276_v1 = vmul.f32 %v4136_v26, %v3320_v56  ;;  %v1376_v3 = vmul.f32 %v4138_v7, %v3322_v57 }
 0x22a   : > { %v1775_v42 = vmul.f32 %v3336_v14, %v1739_v49  ;;  %v1676_v8 = vadd.f32 %v1644_v47, %v1576_v59  ;;  %v1040_v48 = vadd.f32 %v1008_v51, %v940_v13  ;;  %v1708_v36 = vadd.f32 %v1407_v30, %v1139_v5  ;;  %v1443_v47 = vld [vmem:[#allocation2 + $0x227] sm:$0xff] }
 0x22b   : > { %v1308_v20 = vadd.f32 %v1276_v1, %v1208_v28  ;;  %v1477_v53 = vmul.f32 %v3326_v60, %v1441_v24  ;;  %v1545_v31 = vmul.f32 %v3328_v61, %v1509_v17  ;;  %v1645_v27 = vmul.f32 %v3330_v62, %v1609_v16  ;;  %v1511_v30 = vld [vmem:[#allocation2 + $0x228] sm:$0xff] }
 0x22c   : > { %v1811_v45 = vadd.f32 %v3338_v15, %v1775_v42  ;;  %v1140_v0 = vadd.f32 %v1108_v18, %v1040_v48  ;;  %v941_v43 = vmul.f32 %v4105_v39, %v3281_v11  ;;  %v1740_v46 = vadd.f32 %v1708_v36, %v1676_v8  ;;  %v1611_v18 = vld [vmem:[#allocation2 + $0x229] sm:$0xff] }
 0x22d   : > { %v1408_v38 = vadd.f32 %v1376_v3, %v1308_v20  ;;  %v1577_v32 = vadd.f32 %v1545_v31, %v1477_v53  ;;  %v1009_v54 = vmul.f32 %v4107_v37, %v3285_v12  ;;  %v1109_v58 = vmul.f32 %v4109_v19, %v3298_v34 }
 0x22e   : > { %2766 = vmatprep.mubr.msk.f32.mxu1 %vm401_vm0, %v1811_v45  ;;  %v1209_v21 = vmul.f32 %v4159_v52, %v3318_v55  ;;  %v1277_v39 = vmul.f32 %v4161_v50, %v3320_v56  ;;  %v1377_v9 = vmul.f32 %v4168_v22, %v3322_v57  ;;  %v1776_v29 = vmul.f32 %v3336_v14, %v1740_v46  ;;  %v1512_v45 = vld [vmem:[#allocation2 + $0x230] sm:$0xff] }
 0x22f   : > { %v1677_v37 = vadd.f32 %v1645_v27, %v1577_v32  ;;  %v1709_v10 = vadd.f32 %v1408_v38, %v1140_v0  ;;  %v1041_v25 = vadd.f32 %v1009_v54, %v941_v43  ;;  %v1478_v41 = vmul.f32 %v3326_v60, %v1442_v23  ;;  %v1612_v38 = vld [vmem:[#allocation2 + $0x231] sm:$0xff] }
 0x230   : > { %v1309_v63 = vadd.f32 %v1277_v39, %v1209_v21  ;;  %v1546_v2 = vmul.f32 %v3328_v61, %v1510_v6  ;;  %v1646_v19 = vmul.f32 %v3330_v62, %v1610_v40  ;;  %v1812_v4 = vadd.f32 %v3338_v15, %v1776_v29 }
 0x231   : > { %v1741_v35 = vadd.f32 %v1709_v10, %v1677_v37  ;;  %v1141_v5 = vadd.f32 %v1109_v58, %v1041_v25  ;;  %v942_v33 = vmul.f32 %v4130_v44, %v3281_v11  ;;  %v1010_v13 = vmul.f32 %v4136_v26, %v3285_v12 }
 0x232   : > { %v1409_v49 = vadd.f32 %v1377_v9, %v1309_v63  ;;  %v1578_v59 = vadd.f32 %v1546_v2, %v1478_v41  ;;  %v1110_v51 = vmul.f32 %v4138_v7, %v3298_v34  ;;  %2767 = vmatmul.mubr.msk.f32.gmra.mrb[26].mxu1 %vm401_vm0, %v1812_v4  ;;  %v1210_v1 = vmul.f32 %v1441_v24, %v3318_v55 }
 0x233   : > { %v1777_v28 = vmul.f32 %v3336_v14, %v1741_v35  ;;  %v1278_v42 = vmul.f32 %v1509_v17, %v3320_v56  ;;  %v1378_v44 = vmul.f32 %v1609_v16, %v3322_v57  ;;  %v1042_v3 = vadd.f32 %v1010_v13, %v942_v33  ;;  %v1444_v16 = vld [vmem:[#allocation2 + $0x22f] sm:$0xff] }
 0x234   : > { %v1678_v8 = vadd.f32 %v1646_v19, %v1578_v59  ;;  %v1710_v48 = vadd.f32 %v1409_v49, %v1141_v5  ;;  %v1479_v26 = vmul.f32 %v3326_v60, %v1443_v47  ;;  %v1547_v20 = vmul.f32 %v3328_v61, %v1511_v30 }
 0x235   : > { %v1813_v36 = vadd.f32 %v3338_v15, %v1777_v28  ;;  %v1310_v7 = vadd.f32 %v1278_v42, %v1210_v1  ;;  %v1647_v53 = vmul.f32 %v3330_v62, %v1611_v18  ;;  %v943_v24 = vmul.f32 %v4159_v52, %v3281_v11 }
 0x236   : > { %v1742_v31 = vadd.f32 %v1710_v48, %v1678_v8  ;;  %v1011_v17 = vmul.f32 %v4161_v50, %v3285_v12  ;;  %v1142_v0 = vadd.f32 %v1110_v51, %v1042_v3  ;;  %v1579_v43 = vadd.f32 %v1547_v20, %v1479_v26 }
 0x237   : > { %2769 = vmatprep.mubr.msk.f32.mxu1 %vm401_vm0, %v1813_v36  ;;  %v1410_v27 = vadd.f32 %v1378_v44, %v1310_v7  ;;  %v1211_v46 = vmul.f32 %v1442_v23, %v3318_v55  ;;  %v1111_v58 = vmul.f32 %v4168_v22, %v3298_v34  ;;  %v1279_v11 = vmul.f32 %v1510_v6, %v3320_v56 }
 0x238   : > { %v1778_v32 = vmul.f32 %v3336_v14, %v1742_v31  ;;  %v1043_v54 = vadd.f32 %v1011_v17, %v943_v24  ;;  %v1679_v52 = vadd.f32 %v1647_v53, %v1579_v43  ;;  %v1480_v50 = vmul.f32 %v3326_v60, %v1444_v16 }
 0x239   : > { %v1711_v12 = vadd.f32 %v1410_v27, %v1142_v0  ;;  %v1548_v21 = vmul.f32 %v3328_v61, %v1512_v45  ;;  %v1311_v9 = vadd.f32 %v1279_v11, %v1211_v46  ;;  %v1379_v55 = vmul.f32 %v1610_v40, %v3322_v57  ;;  %v4263_v40 = vld [vmem:[%s4550_s5 + $0x1] ss:$0 sm:$0xff] }
 0x23a   : > { %v1814_v39 = vadd.f32 %v3338_v15, %v1778_v32  ;;  %v1648_v23 = vmul.f32 %v3330_v62, %v1612_v38  ;;  %v1143_v34 = vadd.f32 %v1111_v58, %v1043_v54  ;;  %v4258_v62 = vld [vmem:[%s4550_s5] ss:$0 sm:$0xff] }
 0x23b   : > { %v1743_v29 = vadd.f32 %v1711_v12, %v1679_v52  ;;  %v1580_v37 = vadd.f32 %v1548_v21, %v1480_v50  ;;  %v1411_v22 = vadd.f32 %v1379_v55, %v1311_v9 }
 0x23c   : > { %2770 = vmatmul.mubr.msk.f32.gmra.mrb[28].mxu1 %vm401_vm0, %v1814_v39 }
 0x23d   : > { %v1779_v56 = vmul.f32 %v3336_v14, %v1743_v29  ;;  %v1680_v6 = vadd.f32 %v1648_v23, %v1580_v37  ;;  %v1712_v10 = vadd.f32 %v1411_v22, %v1143_v34 }
 0x23f   : > { %v1815_v60 = vadd.f32 %v3338_v15, %v1779_v56  ;;  %v1744_v61 = vadd.f32 %v1712_v10, %v1680_v6 }
 0x241   : > { %2772 = vmatprep.mubr.msk.f32.mxu1 %vm401_vm0, %v1815_v60  ;;  %v1780_v25 = vmul.f32 %v3336_v14, %v1744_v61 }
 0x243   : > { %v1816_v57 = vadd.f32 %v3338_v15, %v1780_v25 }
 0x245   : > { %2773 = vmatmul.mubr.msk.f32.gmra.mrb[30].mxu1 %vm401_vm0, %v1816_v57 }
 0x27a   : > { %v2729_v63 = vpop.f32.mrb[0].mxu1 }
 0x27b   : > { %v2146_v41 = vmul.f32 %v2729_v63, %v4258_v62  ;;  %v1982_v2 = vpop.f32.mrb[1].mxu1 }
 0x27c   : > { %v2145_v14 = vmul.f32 %v4258_v62, %v1982_v2 }
 0x27d   : > { %v2182_v15 = vadd.f32 %v4263_v40, %v2146_v41 }
 0x27e   : > { %v2181_v19 = vadd.f32 %v4263_v40, %v2145_v14 }
 0x27f   : > { %v2214_v4 = vmax.f32 %v2182_v15, 0.0 }
 0x280   : > { %v2213_v35 = vmax.f32 %v2181_v19, 0.0 }
 0x281   : > { %2279 = vrot.lane.b32.xlu1 %v2214_v4, %s2964_s26 }
 0x282   : > { %2277 = vrot.lane.b32.xlu0 %v2213_v35, %s2964_s26 }
 0x287   : > { %v2732_v5 = vpop.f32.mrb[2].mxu1 }
 0x288   : > { %v2148_v33 = vmul.f32 %v2732_v5, %v4258_v62  ;;  %v1992_v47 = vpop.f32.mrb[3].mxu1 }
 0x289   : > { %v2147_v49 = vmul.f32 %v4258_v62, %v1992_v47 }
 0x28a   : > { %v2184_v59 = vadd.f32 %v4263_v40, %v2148_v33 }
 0x28b   : > { %v2183_v13 = vadd.f32 %v4263_v40, %v2147_v49 }
 0x28c   : > { %v2216_v51 = vmax.f32 %v2184_v59, 0.0 }
 0x28d   : > { %v2215_v30 = vmax.f32 %v2183_v13, 0.0 }
 0x28e   : > { %2283 = vrot.lane.b32.xlu1 %v2216_v51, %s2964_s26 }
 0x28f   : > { %2281 = vrot.lane.b32.xlu0 %v2215_v30, %s2964_s26 }
 0x294   : > { %v2735_v18 = vpop.f32.mrb[4].mxu1 }
 0x295   : > { %v2150_v28 = vmul.f32 %v2735_v18, %v4258_v62  ;;  %v2002_v1 = vpop.f32.mrb[5].mxu1 }
 0x296   : > { %v2149_v42 = vmul.f32 %v4258_v62, %v2002_v1 }
 0x297   : > { %v2186_v44 = vadd.f32 %v4263_v40, %v2150_v28 }
 0x298   : > { %v2185_v8 = vadd.f32 %v4263_v40, %v2149_v42 }
 0x299   : > { %v2218_v48 = vmax.f32 %v2186_v44, 0.0 }
 0x29a   : > { %v2217_v3 = vmax.f32 %v2185_v8, 0.0 }
 0x29b   : > { %2287 = vrot.lane.b32.xlu1 %v2218_v48, %s2964_s26 }
 0x29c   : > { %2285 = vrot.lane.b32.xlu0 %v2217_v3, %s2964_s26 }
 0x29f   : > { %v2738_v26 = vpop.f32.mrb[6].mxu1 }
 0x2a0   : > { %v2152_v36 = vmul.f32 %v2738_v26, %v4258_v62  ;;  %v2012_v7 = vpop.f32.mrb[7].mxu1 }
 0x2a1   : > { %v2151_v20 = vmul.f32 %v4258_v62, %v2012_v7 }
 0x2a2   : > { %v2188_v53 = vadd.f32 %v4263_v40, %v2152_v36 }
 0x2a3   : > { %v2187_v31 = vadd.f32 %v4263_v40, %v2151_v20 }
 0x2a4   : > { %v2220_v24 = vmax.f32 %v2188_v53, 0.0 }
 0x2a5   : > { %v2219_v17 = vmax.f32 %v2187_v31, 0.0 }
 0x2a6   : > { %2291 = vrot.lane.b32.xlu1 %v2220_v24, %s2964_s26 }
 0x2a7   : > { %2289 = vrot.lane.b32.xlu0 %v2219_v17, %s2964_s26 }
 0x2ab   : > { %v2741_v16 = vpop.f32.mrb[8].mxu1 }
 0x2ac   : > { %v2154_v45 = vmul.f32 %v2741_v16, %v4258_v62  ;;  %v2022_v0 = vpop.f32.mrb[9].mxu1  ;;  %v2829_v16 = vld [vmem:[%s3112_s13 + $0x8] sm:$0xff] }
 0x2ad   : > { %v2153_v27 = vmul.f32 %v4258_v62, %v2022_v0 }
 0x2ae   : > { %v2190_v43 = vadd.f32 %v4263_v40, %v2154_v45 }
 0x2af   : > { %v2189_v46 = vadd.f32 %v4263_v40, %v2153_v27 }
 0x2b0   : > { %v2222_v38 = vmax.f32 %v2190_v43, 0.0  ;;  %v2830_v43 = vld [vmem:[%s3112_s13] sm:$0xff] }
 0x2b1   : > { %v2221_v32 = vmax.f32 %v2189_v46, 0.0 }
 0x2b2   : > { %2295 = vrot.lane.b32.xlu1 %v2222_v38, %s2964_s26 }
 0x2b3   : > { %2293 = vrot.lane.b32.xlu0 %v2221_v32, %s2964_s26 }
 0x2b6   : > { %v2744_v54 = vpop.f32.mrb[10].mxu1 }
 0x2b7   : > { %v2156_v58 = vmul.f32 %v2744_v54, %v4258_v62  ;;  %v2032_v11 = vpop.f32.mrb[11].mxu1 }
 0x2b8   : > { %v2155_v52 = vmul.f32 %v4258_v62, %v2032_v11 }
 0x2b9   : > { %v2192_v12 = vadd.f32 %v4263_v40, %v2156_v58 }
 0x2ba   : > { %v2191_v50 = vadd.f32 %v4263_v40, %v2155_v52 }
 0x2bb   : > { %v2224_v21 = vmax.f32 %v2192_v12, 0.0 }
 0x2bc   : > { %v2223_v39 = vmax.f32 %v2191_v50, 0.0 }
 0x2bd   : > { %2299 = vrot.lane.b32.xlu1 %v2224_v21, %s2964_s26 }
 0x2be   : > { %2297 = vrot.lane.b32.xlu0 %v2223_v39, %s2964_s26 }
 0x2c1   : > { %v2747_v9 = vpop.f32.mrb[12].mxu1 }
 0x2c2   : > { %v2158_v55 = vmul.f32 %v2747_v9, %v4258_v62  ;;  %v2042_v23 = vpop.f32.mrb[13].mxu1 }
 0x2c3   : > { %v2157_v29 = vmul.f32 %v4258_v62, %v2042_v23 }
 0x2c4   : > { %v2194_v37 = vadd.f32 %v4263_v40, %v2158_v55  ;;  %v2831_v55 = vld [vmem:[%s3112_s13 + $0x18] sm:$0xff] }
 0x2c5   : > { %v2193_v34 = vadd.f32 %v4263_v40, %v2157_v29 }
 0x2c6   : > { %v2226_v22 = vmax.f32 %v2194_v37, 0.0  ;;  %v2832_v37 = vld [vmem:[%s3112_s13 + $0x10] sm:$0xff] }
 0x2c7   : > { %v2225_v56 = vmax.f32 %v2193_v34, 0.0 }
 0x2c8   : > { %2303 = vrot.lane.b32.xlu1 %v2226_v22, %s2964_s26 }
 0x2c9   : > { %2301 = vrot.lane.b32.xlu0 %v2225_v56, %s2964_s26 }
 0x2cd   : > { %v2750_v6 = vpop.f32.mrb[14].mxu1 }
 0x2ce   : > { %v2160_v10 = vmul.f32 %v2750_v6, %v4258_v62  ;;  %v2052_v60 = vpop.f32.mrb[15].mxu1 }
 0x2cf   : > { %v2159_v61 = vmul.f32 %v4258_v62, %v2052_v60 }
 0x2d0   : > { %v2196_v25 = vadd.f32 %v4263_v40, %v2160_v10 }
 0x2d1   : > { %v2195_v57 = vadd.f32 %v4263_v40, %v2159_v61 }
 0x2d2   : > { %v2228_v63 = vmax.f32 %v2196_v25, 0.0 }
 0x2d3   : > { %v2227_v41 = vmax.f32 %v2195_v57, 0.0 }
 0x2d4   : > { %2307 = vrot.lane.b32.xlu1 %v2228_v63, %s2964_s26 }
 0x2d5   : > { %2305 = vrot.lane.b32.xlu0 %v2227_v41, %s2964_s26 }
 0x2d6   : > { %v2753_v2 = vpop.f32.mrb[16].mxu1 }
 0x2d7   : > { %v2162_v14 = vmul.f32 %v2753_v2, %v4258_v62  ;;  %v2062_v15 = vpop.f32.mrb[17].mxu1 }
 0x2d8   : > { %v2161_v19 = vmul.f32 %v4258_v62, %v2062_v15  ;;  %v2833_v15 = vld [vmem:[%s3112_s13 + $0x28] sm:$0xff] }
 0x2d9   : > { %v2198_v4 = vadd.f32 %v4263_v40, %v2162_v14 }
 0x2da   : > { %v2197_v35 = vadd.f32 %v4263_v40, %v2161_v19 }
 0x2db   : > { %v2230_v5 = vmax.f32 %v2198_v4, 0.0 }
 0x2dc   : > { %v2229_v33 = vmax.f32 %v2197_v35, 0.0 }
 0x2dd   : > { %2311 = vrot.lane.b32.xlu1 %v2230_v5, %s2964_s26  ;;  %v2834_v5 = vld [vmem:[%s3112_s13 + $0x20] sm:$0xff] }
 0x2de   : > { %2309 = vrot.lane.b32.xlu0 %v2229_v33, %s2964_s26 }
 0x2df   : > { %v2756_v47 = vpop.f32.mrb[18].mxu1 }
 0x2e0   : > { %v2164_v49 = vmul.f32 %v2756_v47, %v4258_v62  ;;  %v2072_v59 = vpop.f32.mrb[19].mxu1 }
 0x2e1   : > { %v2163_v13 = vmul.f32 %v4258_v62, %v2072_v59 }
 0x2e2   : > { %v2200_v51 = vadd.f32 %v4263_v40, %v2164_v49 }
 0x2e3   : > { %v2199_v30 = vadd.f32 %v4263_v40, %v2163_v13 }
 0x2e4   : > { %v2232_v18 = vmax.f32 %v2200_v51, 0.0 }
 0x2e5   : > { %v2231_v28 = vmax.f32 %v2199_v30, 0.0 }
 0x2e6   : > { %2315 = vrot.lane.b32.xlu1 %v2232_v18, %s2964_s26 }
 0x2e7   : > { %2313 = vrot.lane.b32.xlu0 %v2231_v28, %s2964_s26 }
 0x2e9   : > { %v2759_v1 = vpop.f32.mrb[20].mxu1 }
 0x2ea   : > { %v2166_v42 = vmul.f32 %v2759_v1, %v4258_v62  ;;  %v2082_v44 = vpop.f32.mrb[21].mxu1 }
 0x2eb   : > { %v2165_v8 = vmul.f32 %v4258_v62, %v2082_v44 }
 0x2ec   : > { %v2202_v48 = vadd.f32 %v4263_v40, %v2166_v42  ;;  %v2835_v42 = vld [vmem:[%s3112_s13 + $0x38] sm:$0xff] }
 0x2ed   : > { %v2201_v3 = vadd.f32 %v4263_v40, %v2165_v8 }
 0x2ee   : > { %v2234_v26 = vmax.f32 %v2202_v48, 0.0 }
 0x2ef   : > { %v2233_v36 = vmax.f32 %v2201_v3, 0.0  ;;  %v2836_v3 = vld [vmem:[%s3112_s13 + $0x30] sm:$0xff] }
 0x2f0   : > { %2319 = vrot.lane.b32.xlu1 %v2234_v26, %s2964_s26 }
 0x2f1   : > { %2317 = vrot.lane.b32.xlu0 %v2233_v36, %s2964_s26 }
 0x2f2   : > { %v2762_v7 = vpop.f32.mrb[22].mxu1 }
 0x2f3   : > { %v2168_v20 = vmul.f32 %v2762_v7, %v4258_v62  ;;  %v2092_v53 = vpop.f32.mrb[23].mxu1  ;;  %v2280_v24 = vpop.permute.xlu1 %2279 }
 0x2f4   : > { %v2167_v31 = vmul.f32 %v4258_v62, %v2092_v53  ;;  %v2374_v45 = vsel %vm401_vm0, %v2829_v16, %v2280_v24  ;;  %v2278_v0 = vpop.permute.xlu0 %2277  ;;  %v2837_v53 = vld [vmem:[%s3112_s13 + $0x48] sm:$0xff] }
 0x2f5   : > { %v2204_v17 = vadd.f32 %v4263_v40, %v2168_v20  ;;  %2407 = vst.msk [vmem:[%s4339_s28 + $0x8] sm:$0xff] %vm2405_vm2, %v2374_v45  ;;  %v2373_v46 = vsel %vm401_vm0, %v2830_v43, %v2278_v0  ;;  %v2839_v45 = vld [vmem:[%s3112_s13 + $0x58] sm:$0xff]  ;;  %v2840_v43 = vld [vmem:[%s3112_s13 + $0x50] sm:$0xff] }
 0x2f6   : > { %v2203_v27 = vadd.f32 %v4263_v40, %v2167_v31  ;;  %2406 = vst.msk [vmem:[%s4339_s28] sm:$0xff] %vm2405_vm2, %v2373_v46 }
 0x2f7   : > { %v2236_v38 = vmax.f32 %v2204_v17, 0.0 }
 0x2f8   : > { %v2235_v32 = vmax.f32 %v2203_v27, 0.0 }
 0x2f9   : > { %2323 = vrot.lane.b32.xlu1 %v2236_v38, %s2964_s26 }
 0x2fa   : > { %2321 = vrot.lane.b32.xlu0 %v2235_v32, %s2964_s26  ;;  %v2841_v32 = vld [vmem:[%s3112_s13 + $0x68] sm:$0xff] }
 0x2fc   : > { %v2765_v54 = vpop.f32.mrb[24].mxu1 }
 0x2fd   : > { %v2170_v58 = vmul.f32 %v2765_v54, %v4258_v62  ;;  %v2102_v11 = vpop.f32.mrb[25].mxu1 }
 0x2fe   : > { %v2169_v52 = vmul.f32 %v4258_v62, %v2102_v11  ;;  %v2842_v11 = vld [vmem:[%s3112_s13 + $0x60] sm:$0xff] }
 0x2ff   : > { %v2206_v12 = vadd.f32 %v4263_v40, %v2170_v58 }
 0x300   : > { %v2205_v50 = vadd.f32 %v4263_v40, %v2169_v52  ;;  %v2284_v9 = vpop.permute.xlu1 %2283 }
 0x301   : > { %v2238_v21 = vmax.f32 %v2206_v12, 0.0  ;;  %v2376_v23 = vsel %vm401_vm0, %v2831_v55, %v2284_v9  ;;  %v2282_v29 = vpop.permute.xlu0 %2281  ;;  %v2844_v9 = vld [vmem:[%s3112_s13 + $0x70] sm:$0xff] }
 0x302   : > { %v2237_v39 = vmax.f32 %v2205_v50, 0.0  ;;  %2409 = vst.msk [vmem:[%s4339_s28 + $0x18] sm:$0xff] %vm2405_vm2, %v2376_v23  ;;  %v2375_v34 = vsel %vm401_vm0, %v2832_v37, %v2282_v29  ;;  %v2843_v50 = vld [vmem:[%s3112_s13 + $0x78] sm:$0xff]  ;;  %v2845_v29 = vld [vmem:[%s3112_s13 + $0x88] sm:$0xff] }
 0x303   : > { %2327 = vrot.lane.b32.xlu1 %v2238_v21, %s2964_s26  ;;  %2408 = vst.msk [vmem:[%s4339_s28 + $0x10] sm:$0xff] %vm2405_vm2, %v2375_v34 }
 0x304   : > { %2325 = vrot.lane.b32.xlu0 %v2237_v39, %s2964_s26 }
 0x305   : > { %v2768_v22 = vpop.f32.mrb[26].mxu1 }
 0x306   : > { %v2172_v56 = vmul.f32 %v2768_v22, %v4258_v62  ;;  %v2112_v6 = vpop.f32.mrb[27].mxu1  ;;  %v2846_v22 = vld [vmem:[%s3112_s13 + $0x80] sm:$0xff] }
 0x307   : > { %v2171_v10 = vmul.f32 %v4258_v62, %v2112_v6 }
 0x308   : > { %v2208_v60 = vadd.f32 %v4263_v40, %v2172_v56 }
 0x309   : > { %v2207_v61 = vadd.f32 %v4263_v40, %v2171_v10  ;;  %v2847_v10 = vld [vmem:[%s3112_s13 + $0x98] sm:$0xff] }
 0x30a   : > { %v2240_v25 = vmax.f32 %v2208_v60, 0.0 }
 0x30b   : > { %v2239_v57 = vmax.f32 %v2207_v61, 0.0 }
 0x30c   : > { %2331 = vrot.lane.b32.xlu1 %v2240_v25, %s2964_s26  ;;  %v2848_v25 = vld [vmem:[%s3112_s13 + $0x90] sm:$0xff] }
 0x30d   : > { %2329 = vrot.lane.b32.xlu0 %v2239_v57, %s2964_s26  ;;  %v2288_v41 = vpop.permute.xlu1 %2287 }
 0x30e   : > { %v2378_v19 = vsel %vm401_vm0, %v2833_v15, %v2288_v41  ;;  %v2286_v4 = vpop.permute.xlu0 %2285  ;;  %v2849_v41 = vld [vmem:[%s3112_s13 + $0xa8] sm:$0xff]  ;;  %v2850_v15 = vld [vmem:[%s3112_s13 + $0xa0] sm:$0xff] }
 0x30f   : > { %v2771_v63 = vpop.f32.mrb[28].mxu1  ;;  %2411 = vst.msk [vmem:[%s4339_s28 + $0x28] sm:$0xff] %vm2405_vm2, %v2378_v19  ;;  %v2377_v33 = vsel %vm401_vm0, %v2834_v5, %v2286_v4 }
 0x310   : > { %v2174_v2 = vmul.f32 %v2771_v63, %v4258_v62  ;;  %v2122_v14 = vpop.f32.mrb[29].mxu1  ;;  %2410 = vst.msk [vmem:[%s4339_s28 + $0x20] sm:$0xff] %vm2405_vm2, %v2377_v33 }
 0x311   : > { %v2173_v35 = vmul.f32 %v4258_v62, %v2122_v14 }
 0x312   : > { %v2210_v47 = vadd.f32 %v4263_v40, %v2174_v2 }
 0x313   : > { %v2209_v49 = vadd.f32 %v4263_v40, %v2173_v35  ;;  %v2851_v35 = vld [vmem:[%s3112_s13 + $0xb8] sm:$0xff] }
 0x314   : > { %v2242_v59 = vmax.f32 %v2210_v47, 0.0  ;;  %v2852_v47 = vld [vmem:[%s3112_s13 + $0xb0] sm:$0xff] }
 0x315   : > { %v2241_v13 = vmax.f32 %v2209_v49, 0.0 }
 0x316   : > { %2335 = vrot.lane.b32.xlu1 %v2242_v59, %s2964_s26 }
 0x317   : > { %2333 = vrot.lane.b32.xlu0 %v2241_v13, %s2964_s26  ;;  %v2853_v13 = vld [vmem:[%s3112_s13 + $0xc8] sm:$0xff] }
 0x318   : > { %v2774_v51 = vpop.f32.mrb[30].mxu1  ;;  %v2292_v28 = vpop.permute.xlu1 %2291 }
 0x319   : > { %v2176_v30 = vmul.f32 %v2774_v51, %v4258_v62  ;;  %v2132_v18 = vpop.f32.mrb[31].mxu1  ;;  %v2380_v44 = vsel %vm401_vm0, %v2835_v42, %v2292_v28  ;;  %v2290_v8 = vpop.permute.xlu0 %2289  ;;  %v2855_v42 = vld [vmem:[%s3112_s13 + $0xd8] sm:$0xff] }
 0x31a   : > { %v2175_v1 = vmul.f32 %v4258_v62, %v2132_v18  ;;  %2413 = vst.msk [vmem:[%s4339_s28 + $0x38] sm:$0xff] %vm2405_vm2, %v2380_v44  ;;  %v2379_v26 = vsel %vm401_vm0, %v2836_v3, %v2290_v8  ;;  %v2854_v18 = vld [vmem:[%s3112_s13 + $0xc0] sm:$0xff] }
 0x31b   : > { %v2212_v48 = vadd.f32 %v4263_v40, %v2176_v30  ;;  %2412 = vst.msk [vmem:[%s4339_s28 + $0x30] sm:$0xff] %vm2405_vm2, %v2379_v26 }
 0x31c   : > { %v2211_v36 = vadd.f32 %v4263_v40, %v2175_v1  ;;  %v2838_v40 = vld [vmem:[%s3112_s13 + $0x40] sm:$0xff] }
 0x31d   : > { %v2244_v62 = vmax.f32 %v2212_v48, 0.0  ;;  %v2856_v48 = vld [vmem:[%s3112_s13 + $0xd0] sm:$0xff] }
 0x31e   : > { %v2243_v7 = vmax.f32 %v2211_v36, 0.0  ;;  %v2857_v36 = vld [vmem:[%s3112_s13 + $0xe8] sm:$0xff] }
 0x31f   : > { %2339 = vrot.lane.b32.xlu1 %v2244_v62, %s2964_s26 }
 0x320   : > { %2337 = vrot.lane.b32.xlu0 %v2243_v7, %s2964_s26 }
 0x324   : > { %v2296_v20 = vpop.permute.xlu1 %2295 }
 0x325   : > { %v2382_v31 = vsel %vm401_vm0, %v2837_v53, %v2296_v20  ;;  %v2294_v24 = vpop.permute.xlu0 %2293  ;;  %v2858_v20 = vld [vmem:[%s3112_s13 + $0xe0] sm:$0xff] }
 0x326   : > { %2415 = vst.msk [vmem:[%s4339_s28 + $0x48] sm:$0xff] %vm2405_vm2, %v2382_v31  ;;  %v2381_v17 = vsel %vm401_vm0, %v2838_v40, %v2294_v24  ;;  %v2859_v24 = vld [vmem:[%s3112_s13 + $0xf8] sm:$0xff] }
 0x327   : > { %2414 = vst.msk [vmem:[%s4339_s28 + $0x40] sm:$0xff] %vm2405_vm2, %v2381_v17 }
 0x32f   : > { %v2300_v16 = vpop.permute.xlu1 %2299 }
 0x330   : > { %v2384_v0 = vsel %vm401_vm0, %v2839_v45, %v2300_v16  ;;  %v2298_v27 = vpop.permute.xlu0 %2297  ;;  %v2860_v16 = vld [vmem:[%s3112_s13 + $0xf0] sm:$0xff] }
 0x331   : > { %2417 = vst.msk [vmem:[%s4339_s28 + $0x58] sm:$0xff] %vm2405_vm2, %v2384_v0  ;;  %v2383_v46 = vsel %vm401_vm0, %v2840_v43, %v2298_v27 }
 0x332   : > { %2416 = vst.msk [vmem:[%s4339_s28 + $0x50] sm:$0xff] %vm2405_vm2, %v2383_v46 }
 0x33a   : > { %v2304_v38 = vpop.permute.xlu1 %2303 }
 0x33b   : > { %v2386_v54 = vsel %vm401_vm0, %v2841_v32, %v2304_v38  ;;  %v2302_v58 = vpop.permute.xlu0 %2301 }
 0x33c   : > { %2419 = vst.msk [vmem:[%s4339_s28 + $0x68] sm:$0xff] %vm2405_vm2, %v2386_v54  ;;  %v2385_v52 = vsel %vm401_vm0, %v2842_v11, %v2302_v58 }
 0x33d   : > { %2418 = vst.msk [vmem:[%s4339_s28 + $0x60] sm:$0xff] %vm2405_vm2, %v2385_v52 }
 0x346   : > { %v2308_v12 = vpop.permute.xlu1 %2307 }
 0x347   : > { %v2388_v21 = vsel %vm401_vm0, %v2843_v50, %v2308_v12  ;;  %v2306_v39 = vpop.permute.xlu0 %2305 }
 0x348   : > { %2421 = vst.msk [vmem:[%s4339_s28 + $0x78] sm:$0xff] %vm2405_vm2, %v2388_v21  ;;  %v2387_v55 = vsel %vm401_vm0, %v2844_v9, %v2306_v39 }
 0x349   : > { %2420 = vst.msk [vmem:[%s4339_s28 + $0x70] sm:$0xff] %vm2405_vm2, %v2387_v55 }
 0x34f   : > { %v2312_v23 = vpop.permute.xlu1 %2311 }
 0x350   : > { %v2390_v37 = vsel %vm401_vm0, %v2845_v29, %v2312_v23  ;;  %v2310_v34 = vpop.permute.xlu0 %2309 }
 0x351   : > { %2423 = vst.msk [vmem:[%s4339_s28 + $0x88] sm:$0xff] %vm2405_vm2, %v2390_v37  ;;  %v2389_v56 = vsel %vm401_vm0, %v2846_v22, %v2310_v34 }
 0x352   : > { %2422 = vst.msk [vmem:[%s4339_s28 + $0x80] sm:$0xff] %vm2405_vm2, %v2389_v56 }
 0x358   : > { %v2316_v6 = vpop.permute.xlu1 %2315 }
 0x359   : > { %v2392_v60 = vsel %vm401_vm0, %v2847_v10, %v2316_v6  ;;  %v2314_v61 = vpop.permute.xlu0 %2313 }
 0x35a   : > { %2425 = vst.msk [vmem:[%s4339_s28 + $0x98] sm:$0xff] %vm2405_vm2, %v2392_v60  ;;  %v2391_v57 = vsel %vm401_vm0, %v2848_v25, %v2314_v61 }
 0x35b   : > { %2424 = vst.msk [vmem:[%s4339_s28 + $0x90] sm:$0xff] %vm2405_vm2, %v2391_v57 }
 0x362   : > { %v2320_v63 = vpop.permute.xlu1 %2319 }
 0x363   : > { %v2394_v2 = vsel %vm401_vm0, %v2849_v41, %v2320_v63  ;;  %v2318_v14 = vpop.permute.xlu0 %2317 }
 0x364   : > { %2427 = vst.msk [vmem:[%s4339_s28 + $0xa8] sm:$0xff] %vm2405_vm2, %v2394_v2  ;;  %v2393_v19 = vsel %vm401_vm0, %v2850_v15, %v2318_v14 }
 0x365   : > { %2426 = vst.msk [vmem:[%s4339_s28 + $0xa0] sm:$0xff] %vm2405_vm2, %v2393_v19 }
 0x36b   : > { %v2324_v4 = vpop.permute.xlu1 %2323 }
 0x36c   : > { %v2396_v5 = vsel %vm401_vm0, %v2851_v35, %v2324_v4  ;;  %v2322_v33 = vpop.permute.xlu0 %2321 }
 0x36d   : > { %2429 = vst.msk [vmem:[%s4339_s28 + $0xb8] sm:$0xff] %vm2405_vm2, %v2396_v5  ;;  %v2395_v49 = vsel %vm401_vm0, %v2852_v47, %v2322_v33 }
 0x36e   : > { %2428 = vst.msk [vmem:[%s4339_s28 + $0xb0] sm:$0xff] %vm2405_vm2, %v2395_v49 }
 0x375   : > { %v2328_v59 = vpop.permute.xlu1 %2327 }
 0x376   : > { %v2398_v51 = vsel %vm401_vm0, %v2853_v13, %v2328_v59  ;;  %v2326_v30 = vpop.permute.xlu0 %2325 }
 0x377   : > { %2431 = vst.msk [vmem:[%s4339_s28 + $0xc8] sm:$0xff] %vm2405_vm2, %v2398_v51  ;;  %v2397_v28 = vsel %vm401_vm0, %v2854_v18, %v2326_v30 }
 0x378   : > { %2430 = vst.msk [vmem:[%s4339_s28 + $0xc0] sm:$0xff] %vm2405_vm2, %v2397_v28 }
 0x37e   : > { %v2332_v1 = vpop.permute.xlu1 %2331 }
 0x37f   : > { %v2400_v44 = vsel %vm401_vm0, %v2855_v42, %v2332_v1  ;;  %v2330_v8 = vpop.permute.xlu0 %2329 }
 0x380   : > { %2433 = vst.msk [vmem:[%s4339_s28 + $0xd8] sm:$0xff] %vm2405_vm2, %v2400_v44  ;;  %v2399_v3 = vsel %vm401_vm0, %v2856_v48, %v2330_v8 }
 0x381   : > { %2432 = vst.msk [vmem:[%s4339_s28 + $0xd0] sm:$0xff] %vm2405_vm2, %v2399_v3 }
 0x388   : > { %v2336_v26 = vpop.permute.xlu1 %2335 }
 0x389   : > { %v2402_v62 = vsel %vm401_vm0, %v2857_v36, %v2336_v26  ;;  %v2334_v7 = vpop.permute.xlu0 %2333 }
 0x38a   : > { %2435 = vst.msk [vmem:[%s4339_s28 + $0xe8] sm:$0xff] %vm2405_vm2, %v2402_v62  ;;  %v2401_v53 = vsel %vm401_vm0, %v2858_v20, %v2334_v7 }
 0x38b   : > { %2434 = vst.msk [vmem:[%s4339_s28 + $0xe0] sm:$0xff] %vm2405_vm2, %v2401_v53 }
 0x391   : > { %v2340_v31 = vpop.permute.xlu1 %2339 }
 0x392   : > { %v2404_v40 = vsel %vm401_vm0, %v2859_v24, %v2340_v31  ;;  %v2338_v17 = vpop.permute.xlu0 %2337 }
 0x393   : > { %2437 = vst.msk [vmem:[%s4339_s28 + $0xf8] sm:$0xff] %vm2405_vm2, %v2404_v40  ;;  %v2403_v45 = vsel %vm401_vm0, %v2860_v16, %v2338_v17 }
 0x394   : > { %2436 = vst.msk [vmem:[%s4339_s28 + $0xf0] sm:$0xff] %vm2405_vm2, %v2403_v45 }
 0x395   : > { %2904 = shalt.err (!%p2901_p2)
}
 0x396   : > { %s2905_s13 = scalar_lea.hbm %s4490_s18, 4096  ;;  %s2909_s28 = scalar_lea.hbm %s4551_s6, 8192 }
 0x397   : > { %p2906_p4 = scmp.ne.s32.totalorder %s4490_s18, %s2905_s13  ;;  %p2910_p9 = scmp.lt.u32.totalorder %s4490_s18, %s4551_s6 }
 0x398   : > { %p2911_p1 = scmp.lt.u32.totalorder %s2909_s28, %s2905_s13  ;;  %p2913_p6 = scmp.lt.u32.totalorder %s2905_s13, %s4490_s18 }
 0x399   : > { %p2907_p5 = pnand %p2906_p4, %p4558_p11 }
 0x39a   : > { %p2912_p3 = por %p2911_p1, %p2910_p9 }
 0x39b   : > { %p2908_p7 = pneg %p2907_p5 }
 0x39c   : > { %p2914_p12 = por %p2913_p6, %p2912_p3 }
 0x39e   : > { %p2915_p13 = pnand %p2914_p12, %p2908_p7 }
 0x3a0   : > { %2918 = shalt.err (!%p2915_p13)
}
 0x3a1   : > { %s2966_s8 = smov 128  }
 0x3a2   : > { %2777 = dma.vmem_to_hbm [thread:$0]  (%p4558_p11), %s4494_s12, 4096, %s4490_s18, %s2439_s25, %s2966_s8, %s2966_s8, %s2964_s26  }
 0x3a3 PF: > { %s2467_s19 = sand.u32 1, %s2945_s21   ;;  %p4559_p8 = scmp.ne.s32.totalorder %s4556_s10, 0 }
 0x3a4   : > { %p4560_p10 = scmp.ge.s32.totalorder %s2957_s24, 2  ;;  %s2468_s20 = scalar_lea.sflag [#allocation5], %s2467_s19 }
 0x3a6   : > { %p2784_p0 = pnand %p4560_p10, %p4559_p8 }
 0x3a8   : > { %2940 = dma.done.wait (!%p2784_p0), %s2468_s20, 4096  }
 0x3a9   : > { %2942 = vsyncadd (!%p2784_p0), %s2468_s20, 4294963200  ;;  %p19_p2 = scmp.ge.s32.totalorder %s3027_s27, 4   ;;  %s4561_s21 = smov %s2949_s22 }
 0x3aa   : > { %s4562_s22 = smov %s2953_s23  ;;  %s4563_s23 = smov %s3039_s30 }
 0x3ab   : > { %s4564_s24 = smov %s3027_s27  ;;  %21 = sbr.rel (!%p19_p2) target bundleno = 5 (0x5), region = 92 }
 0x3b2   :  { %2473 = vsyncpa [#allocation4], 1 }
 0x3b3   :  { %2475 = vsyncpa [#allocation4 + $0x1], 1 }
 0x3b4   :  { %2476 = vsyncpa [#allocation5], 1 }
 0x3b5   :  { %2478 = vsyncpa [#allocation5 + $0x1], 1 }

</bundles_post_ra>
